<compile_context>
chip_gen: v7x
topology: tpu7x:2x2x1
jax: 0.10.0
libtpu: 0.0.40
codegen_flags: <defaults>
</compile_context>

<pallas_src>
import functools

import jax
import jax.numpy as jnp
from jax import lax
from jax.experimental import pallas as pl
from jax.experimental.pallas import tpu as pltpu


# ------------------------------ Pallas kernel ------------------------------

def _kl_partial_kernel(p_ref, q_ref, out_ref, *, num_rows, block_rows, mask_rows):
    """One grid step: partial KL sum of a (block_rows, K) tile of rows."""
    p = p_ref[...]          # [TM, K] float32
    q = q_ref[...]

    if mask_rows:
        # Ragged last tile: zero out rows past num_rows.  Zeroed rows give
        # identical (uniform) p and q distributions -> exactly 0 KL, and the
        # bitwise select also stops any garbage/NaN from the padded DMA region.
        row0 = pl.program_id(0) * block_rows
        row_ids = row0 + lax.broadcasted_iota(jnp.int32, p.shape, 0)
        valid = row_ids < num_rows
        p = jnp.where(valid, p, 0.0)
        q = jnp.where(valid, q, 0.0)

    # Numerically stable log-softmax for both distributions.
    p_shift = p - jnp.max(p, axis=-1, keepdims=True)
    q_shift = q - jnp.max(q, axis=-1, keepdims=True)
    p_exp = jnp.exp(p_shift)
    q_exp = jnp.exp(q_shift)
    p_sum = jnp.sum(p_exp, axis=-1, keepdims=True)
    q_sum = jnp.sum(q_exp, axis=-1, keepdims=True)
    log_p = p_shift - jnp.log(p_sum)
    log_q = q_shift - jnp.log(q_sum)
    p_prob = p_exp / p_sum

    # KL(P||Q) summed over categories and over all rows of this tile.
    kl_elem = p_prob * (log_p - log_q)                # [TM, K]
    tile_sum = jnp.sum(kl_elem)                       # scalar partial

    # Lane-dense store: broadcast the partial across a full 128-lane row so the
    # output path is an unmasked vst (no narrow masked stores / 128x padding).
    out_ref[...] = jnp.full(out_ref.shape, tile_sum, dtype=out_ref.dtype)


# ------------------------------ Python wrapper ------------------------------

def categorical_kl_with_free_bits(p_logits, q_logits, free_bits):
    """p_logits, q_logits: [B, L, D, K] float.  Returns (kl_div, real_kl_div) scalars."""
    assert p_logits.shape == q_logits.shape and p_logits.ndim == 4
    B, L, D, K = p_logits.shape
    M = B * L * D

    p2 = p_logits.reshape(M, K).astype(jnp.float32)
    q2 = q_logits.reshape(M, K).astype(jnp.float32)

    # Row tile: ~2 KiB VMEM per row (2 inputs x 2 pipeline buffers x K padded to
    # 128 lanes), so TM=2048 -> ~4 MiB, safely under every generation's default
    # scoped VMEM while amortizing the ~0.35 us per-step overhead.
    def _round_up(x, m):
        return (x + m - 1) // m * m

    TM = min(2048, _round_up(M, 8))
    num_tiles = (M + TM - 1) // TM
    mask_rows = (num_tiles * TM) != M

    kernel = functools.partial(
        _kl_partial_kernel, num_rows=M, block_rows=TM, mask_rows=mask_rows)

    partials = pl.pallas_call(
        kernel,
        out_shape=jax.ShapeDtypeStruct((num_tiles, 1, 128), jnp.float32),
        grid=(num_tiles,),
        in_specs=[
            pl.BlockSpec((TM, K), lambda i: (i, 0)),
            pl.BlockSpec((TM, K), lambda i: (i, 0)),
        ],
        out_specs=pl.BlockSpec((1, 1, 128), lambda i: (i, 0, 0)),
        compiler_params=pltpu.CompilerParams(
            dimension_semantics=("parallel",)),
    )(p2, q2)

    # Tiny scalar epilogue (few-element reduce + clamp) as plain JAX ops.
    real_kl_div = jnp.sum(partials[:, 0, 0]) / (B * L)
    kl_div = jnp.maximum(real_kl_div, free_bits)
    return kl_div, real_kl_div


# --------------------------------- main -------------------------------------

if __name__ == "__main__":
    key = jax.random.PRNGKey(0)
    k_p, k_q = jax.random.split(key, 2)

    # [B, L, D, K]: B=batch, L=sequence, D=#categorical variables, K=#classes
    B, L, D, K = 2, 8, 16, 32
    free_bits = 1.0

    p_logits = jax.random.normal(k_p, (B, L, D, K), dtype=jnp.float32)
    q_logits = jax.random.normal(k_q, (B, L, D, K), dtype=jnp.float32)

    fn = jax.jit(categorical_kl_with_free_bits)
    kl_div, real_kl_div = fn(p_logits, q_logits, free_bits)
    jax.block_until_ready((kl_div, real_kl_div))

    # Pure-JAX reference (same math as torch.distributions.kl for Categorical).
    logp = jax.nn.log_softmax(p_logits, axis=-1)
    logq = jax.nn.log_softmax(q_logits, axis=-1)
    kl_ref = jnp.sum(jnp.exp(logp) * (logp - logq), axis=-1)   # [B, L, D]
    real_ref = jnp.mean(jnp.sum(kl_ref, axis=-1))              # scalar
    kl_ref_clamped = jnp.maximum(real_ref, free_bits)

    assert kl_div.shape == () and real_kl_div.shape == ()
    assert bool(jnp.isfinite(kl_div)) and bool(jnp.isfinite(real_kl_div))
    assert bool(jnp.allclose(real_kl_div, real_ref, rtol=1e-4, atol=1e-4)), \
        (float(real_kl_div), float(real_ref))
    assert bool(jnp.allclose(kl_div, kl_ref_clamped, rtol=1e-4, atol=1e-4))
    assert bool(kl_div >= free_bits - 1e-6)

    print("KERNEL_OK")
</pallas_src>

<mosaic_0001>
module attributes {stable_mosaic.version = 11 : i64} {
  func.func @_kl_partial_kernel(%arg0: i32, %arg1: memref<256x32xf32, #tpu.memory_space<vmem>>, %arg2: memref<256x32xf32, #tpu.memory_space<vmem>>, %arg3: memref<1x1x128xf32, #tpu.memory_space<vmem>>) attributes {dimension_semantics = [#tpu.dimension_semantics<parallel>], iteration_bounds = array<i64: 1>, scalar_prefetch = 0 : i64, scratch_operands = 0 : i64, tpu.core_type = #tpu.core_type<tc>, window_params = [{transform_indices = @transform_0, window_bounds = array<i64: 256, 32>}, {transform_indices = @transform_1, window_bounds = array<i64: 256, 32>}, {transform_indices = @transform_2, window_bounds = array<i64: 1, 1, 128>}]} {
    %c0 = arith.constant 0 : index
    %c0_0 = arith.constant 0 : index
    %0 = vector.load %arg1[%c0, %c0_0] : memref<256x32xf32, #tpu.memory_space<vmem>>, vector<256x32xf32>
    %c0_1 = arith.constant 0 : index
    %c0_2 = arith.constant 0 : index
    %1 = vector.load %arg2[%c0_1, %c0_2] : memref<256x32xf32, #tpu.memory_space<vmem>>, vector<256x32xf32>
    %cst = arith.constant dense<0xFF800000> : vector<256xf32>
    %2 = vector.multi_reduction <maximumf>, %0, %cst [1] : vector<256x32xf32> to vector<256xf32>
    %3 = vector.shape_cast %2 : vector<256xf32> to vector<256x1xf32>
    %4 = vector.broadcast %3 : vector<256x1xf32> to vector<256x32xf32>
    %5 = arith.subf %0, %4 : vector<256x32xf32>
    %cst_3 = arith.constant dense<0xFF800000> : vector<256xf32>
    %6 = vector.multi_reduction <maximumf>, %1, %cst_3 [1] : vector<256x32xf32> to vector<256xf32>
    %7 = vector.shape_cast %6 : vector<256xf32> to vector<256x1xf32>
    %8 = vector.broadcast %7 : vector<256x1xf32> to vector<256x32xf32>
    %9 = arith.subf %1, %8 : vector<256x32xf32>
    %10 = math.exp %5 : vector<256x32xf32>
    %11 = math.exp %9 : vector<256x32xf32>
    %cst_4 = arith.constant dense<0.000000e+00> : vector<256xf32>
    %12 = vector.multi_reduction <add>, %10, %cst_4 [1] : vector<256x32xf32> to vector<256xf32>
    %13 = vector.shape_cast %12 : vector<256xf32> to vector<256x1xf32>
    %cst_5 = arith.constant dense<0.000000e+00> : vector<256xf32>
    %14 = vector.multi_reduction <add>, %11, %cst_5 [1] : vector<256x32xf32> to vector<256xf32>
    %15 = vector.shape_cast %14 : vector<256xf32> to vector<256x1xf32>
    %16 = math.log %13 : vector<256x1xf32>
    %17 = vector.broadcast %16 : vector<256x1xf32> to vector<256x32xf32>
    %18 = arith.subf %5, %17 : vector<256x32xf32>
    %19 = math.log %15 : vector<256x1xf32>
    %20 = vector.broadcast %19 : vector<256x1xf32> to vector<256x32xf32>
    %21 = arith.subf %9, %20 : vector<256x32xf32>
    %22 = vector.broadcast %13 : vector<256x1xf32> to vector<256x32xf32>
    %23 = arith.divf %10, %22 : vector<256x32xf32>
    %24 = arith.subf %18, %21 : vector<256x32xf32>
    %25 = arith.mulf %23, %24 : vector<256x32xf32>
    %26 = vector.shape_cast %25 : vector<256x32xf32> to vector<1x256x32xf32>
    %cst_6 = arith.constant dense<0.000000e+00> : vector<1xf32>
    %27 = vector.multi_reduction <add>, %26, %cst_6 [1, 2] : vector<1x256x32xf32> to vector<1xf32>
    %28 = vector.shape_cast %27 : vector<1xf32> to vector<1x1x1xf32>
    %29 = vector.extract %28[0, 0, 0] : f32 from vector<1x1x1xf32>
    %30 = vector.broadcast %29 : f32 to vector<1x1x128xf32>
    %c0_7 = arith.constant 0 : index
    %c0_8 = arith.constant 0 : index
    %c0_9 = arith.constant 0 : index
    %31 = vector.load %arg3[%c0_7, %c0_8, %c0_9] : memref<1x1x128xf32, #tpu.memory_space<vmem>>, vector<1x1x128xf32>
    tpu.vector_store %arg3[%c0_7, %c0_8, %c0_9], %30 {strides = array<i32>} : memref<1x1x128xf32, #tpu.memory_space<vmem>>, vector<1x1x128xf32>,
    return
  }
  func.func @transform_0(%arg0: i32) -> (i32, i32) {
    %c0_i32 = arith.constant 0 : i32
    %c0_i32_0 = arith.constant 0 : i32
    return %arg0, %c0_i32 : i32, i32
  }
  func.func @transform_1(%arg0: i32) -> (i32, i32) {
    %c0_i32 = arith.constant 0 : i32
    %c0_i32_0 = arith.constant 0 : i32
    return %arg0, %c0_i32 : i32, i32
  }
  func.func @transform_2(%arg0: i32) -> (i32, i32, i32) {
    %c0_i32 = arith.constant 0 : i32
    %c0_i32_0 = arith.constant 0 : i32
    %c0_i32_1 = arith.constant 0 : i32
    return %arg0, %c0_i32, %c0_i32_0 : i32, i32, i32
  }
}

</mosaic_0001>

<bundles_post_ra>
// kernel: categorical_kl_with_free_bits.1
= control target key start
LH: loop header
LB: loop body
LE: loop exit
PB: predicated region body
PF: predicated region fallthrough
CT: control target
= control target key end

     0   :  { %7 = vsyncpa [#allocation3], 0  ;;  %s2373_s0 = inlined_call_operand.hbm [shape: f32[256,32], index: 0, kind: input, shape index: {}]   ;;  %s2374_s1 = inlined_call_operand.hbm [shape: f32[256,32], index: 1, kind: input, shape index: {}]   ;;  %s2375_s2 = inlined_call_operand.vmem [shape: f32[1,1,128], index: 2, kind: output, shape index: {}]  }
   0x1   :  { %8 = vsyncpa [#allocation5], 0  ;;  %s1454_s9 = smov [#allocation2]   ;;  %s1406_s13 = scalar_lea.hbm %s2373_s0, 4096 }
   0x2   :  { %s14_s10 = sshll.u32 %s1454_s9, 4  ;;  %p1407_p0 = scmp.ne.s32.totalorder %s2373_s0, %s1406_s13  ;;  %s15_s10 = int_to_ptr.vmem [resolvable:$true] %s14_s10 }
   0x3   :  { %p1410_p1 = scmp.lt.u32.totalorder %s1406_s13, %s2373_s0 }
   0x5   :  { %p1412_p2 = pnand %p1410_p1, %p1407_p0 }
   0x7   :  { %1415 = shalt.err (!%p1412_p2)
}
   0x8   :  { %s1416_s18 = scalar_lea.vmem %s15_s10, 4096  ;;  %p1421_p4 = scmp.lt.s32.totalorder %s15_s10, %s15_s10 }
   0x9   :  { %p1417_p3 = scmp.ne.s32.totalorder %s15_s10, %s1416_s18  ;;  %p1422_p5 = scmp.lt.s32.totalorder %s1416_s18, %s1416_s18 }
   0xb   :  { %p1423_p6 = por %p1422_p5, %p1421_p4 }
   0xd   :  { %p1424_p7 = pnand %p1423_p6, %p1417_p3 }
   0xf   :  { %1427 = shalt.err (!%p1424_p7)
}
  0x10   :  { %s1455_s19 = smov 128   ;;  %s1456_s20 = smov 8  }
  0x11   :  { %20 = dma.hbm_to_vmem [thread:$0]  %s2373_s0, 4096, %s15_s10, [#allocation3], %s1455_s19, %s1455_s19, %s1456_s20  }
  0x12   :  { %s1457_s23 = smov [#allocation4]   ;;  %s1428_s27 = scalar_lea.hbm %s2374_s1, 4096 }
  0x13   :  { %s26_s24 = sshll.u32 %s1457_s23, 4  ;;  %p1429_p8 = scmp.ne.s32.totalorder %s2374_s1, %s1428_s27  ;;  %s27_s24 = int_to_ptr.vmem [resolvable:$true] %s26_s24 }
  0x14   :  { %p1432_p9 = scmp.lt.u32.totalorder %s1428_s27, %s2374_s1 }
  0x16   :  { %p1434_p10 = pnand %p1432_p9, %p1429_p8 }
  0x18   :  { %1437 = shalt.err (!%p1434_p10)
}
  0x19   :  { %s1438_s4 = scalar_lea.vmem %s27_s24, 4096  ;;  %p1443_p12 = scmp.lt.s32.totalorder %s27_s24, %s27_s24 }
  0x1a   :  { %p1439_p11 = scmp.ne.s32.totalorder %s27_s24, %s1438_s4  ;;  %p1444_p13 = scmp.lt.s32.totalorder %s1438_s4, %s1438_s4 }
  0x1c   :  { %p1445_p0 = por %p1444_p13, %p1443_p12 }
  0x1e   :  { %p1446_p1 = pnand %p1445_p0, %p1439_p11 }
  0x20   :  { %1449 = shalt.err (!%p1446_p1)
}
  0x21   :  { %32 = dma.hbm_to_vmem [thread:$0]  %s2374_s1, 4096, %s27_s24, [#allocation5], %s1455_s19, %s1455_s19, %s1456_s20  }
  0x22   :  { %1450 = dma.done.wait [#allocation3], 4096  }
  0x23   :  { %1451 = vsyncadd [#allocation3], 4294963200 }
  0x24   :  { %1452 = dma.done.wait [#allocation5], 4096  }
  0x25   :  { %1453 = vsyncadd [#allocation5], 4294963200  ;;  %vm103_vm0 = vcmask 261120   ;;  %v1497_v0 = vld [vmem:[#allocation2] sm:$0xff]  ;;  %v1501_v2 = vld [vmem:[#allocation2 + $0x8] sm:$0xff] }
  0x26   :  { %v1499_v1 = vld [vmem:[#allocation4] sm:$0xff]  ;;  %v104_v3 = vsel %vm103_vm0, %v1497_v0, -inf  ;;  %v1507_v5 = vld [vmem:[#allocation4 + $0x8] sm:$0xff]  ;;  %v107_v6 = vsel %vm103_vm0, %v1501_v2, -inf  ;;  %v1513_v8 = vld [vmem:[#allocation2 + $0x10] sm:$0xff] }
  0x27   :  { %v232_v4 = vsel %vm103_vm0, %v1499_v1, -inf  ;;  %105 = vmax.xlane.f32.xlu0 %v104_v3  ;;  %v235_v7 = vsel %vm103_vm0, %v1507_v5, -inf  ;;  %v1515_v9 = vld [vmem:[#allocation4 + $0x10] sm:$0xff]  ;;  %v110_v10 = vsel %vm103_vm0, %v1513_v8, -inf  ;;  %v1521_v12 = vld [vmem:[#allocation2 + $0x18] sm:$0xff]  ;;  %v1529_v16 = vld [vmem:[#allocation2 + $0x20] sm:$0xff] }
  0x28   :  { %233 = vmax.xlane.f32.xlu1 %v232_v4  ;;  %v238_v11 = vsel %vm103_vm0, %v1515_v9, -inf  ;;  %v1523_v13 = vld [vmem:[#allocation4 + $0x18] sm:$0xff]  ;;  %v113_v14 = vsel %vm103_vm0, %v1521_v12, -inf  ;;  %v1531_v17 = vld [vmem:[#allocation4 + $0x20] sm:$0xff]  ;;  %v116_v18 = vsel %vm103_vm0, %v1529_v16, -inf  ;;  %v1537_v20 = vld [vmem:[#allocation2 + $0x28] sm:$0xff] }
  0x29   :  { %v241_v15 = vsel %vm103_vm0, %v1523_v13, -inf  ;;  %v244_v19 = vsel %vm103_vm0, %v1531_v17, -inf  ;;  %v1539_v21 = vld [vmem:[#allocation4 + $0x28] sm:$0xff]  ;;  %v119_v22 = vsel %vm103_vm0, %v1537_v20, -inf  ;;  %v1545_v24 = vld [vmem:[#allocation2 + $0x30] sm:$0xff]  ;;  %v1553_v28 = vld [vmem:[#allocation2 + $0x38] sm:$0xff] }
  0x2a   :  { %v247_v23 = vsel %vm103_vm0, %v1539_v21, -inf  ;;  %v1547_v25 = vld [vmem:[#allocation4 + $0x30] sm:$0xff]  ;;  %v122_v26 = vsel %vm103_vm0, %v1545_v24, -inf  ;;  %v1555_v29 = vld [vmem:[#allocation4 + $0x38] sm:$0xff]  ;;  %v125_v30 = vsel %vm103_vm0, %v1553_v28, -inf  ;;  %v1561_v32 = vld [vmem:[#allocation2 + $0x40] sm:$0xff] }
  0x2b   :  { %108 = vmax.xlane.f32.xlu0 %v107_v6  ;;  %v250_v27 = vsel %vm103_vm0, %v1547_v25, -inf  ;;  %v253_v31 = vsel %vm103_vm0, %v1555_v29, -inf  ;;  %v1563_v33 = vld [vmem:[#allocation4 + $0x40] sm:$0xff]  ;;  %v128_v34 = vsel %vm103_vm0, %v1561_v32, -inf  ;;  %v1569_v36 = vld [vmem:[#allocation2 + $0x48] sm:$0xff]  ;;  %v1577_v40 = vld [vmem:[#allocation2 + $0x50] sm:$0xff] }
  0x2c   :  { %236 = vmax.xlane.f32.xlu1 %v235_v7  ;;  %v256_v35 = vsel %vm103_vm0, %v1563_v33, -inf  ;;  %v1571_v37 = vld [vmem:[#allocation4 + $0x48] sm:$0xff]  ;;  %v131_v38 = vsel %vm103_vm0, %v1569_v36, -inf  ;;  %v1579_v41 = vld [vmem:[#allocation4 + $0x50] sm:$0xff]  ;;  %v134_v42 = vsel %vm103_vm0, %v1577_v40, -inf  ;;  %v1585_v44 = vld [vmem:[#allocation2 + $0x58] sm:$0xff] }
  0x2d   :  { %v259_v39 = vsel %vm103_vm0, %v1571_v37, -inf  ;;  %v262_v43 = vsel %vm103_vm0, %v1579_v41, -inf  ;;  %v1587_v45 = vld [vmem:[#allocation4 + $0x58] sm:$0xff]  ;;  %v137_v46 = vsel %vm103_vm0, %v1585_v44, -inf  ;;  %v1593_v48 = vld [vmem:[#allocation2 + $0x60] sm:$0xff]  ;;  %v1601_v52 = vld [vmem:[#allocation2 + $0x68] sm:$0xff] }
  0x2e   :  { %v265_v47 = vsel %vm103_vm0, %v1587_v45, -inf  ;;  %v1595_v49 = vld [vmem:[#allocation4 + $0x60] sm:$0xff]  ;;  %v140_v50 = vsel %vm103_vm0, %v1593_v48, -inf  ;;  %v1603_v53 = vld [vmem:[#allocation4 + $0x68] sm:$0xff]  ;;  %v143_v54 = vsel %vm103_vm0, %v1601_v52, -inf  ;;  %v1609_v56 = vld [vmem:[#allocation2 + $0x70] sm:$0xff] }
  0x2f   :  { %111 = vmax.xlane.f32.xlu0 %v110_v10  ;;  %v268_v51 = vsel %vm103_vm0, %v1595_v49, -inf  ;;  %v271_v55 = vsel %vm103_vm0, %v1603_v53, -inf  ;;  %v1611_v57 = vld [vmem:[#allocation4 + $0x70] sm:$0xff]  ;;  %v146_v58 = vsel %vm103_vm0, %v1609_v56, -inf  ;;  %v1617_v60 = vld [vmem:[#allocation2 + $0x78] sm:$0xff]  ;;  %v1625_v3 = vld [vmem:[#allocation2 + $0x80] sm:$0xff] }
  0x30   :  { %239 = vmax.xlane.f32.xlu1 %v238_v11  ;;  %v274_v59 = vsel %vm103_vm0, %v1611_v57, -inf  ;;  %v1619_v61 = vld [vmem:[#allocation4 + $0x78] sm:$0xff]  ;;  %v149_v62 = vsel %vm103_vm0, %v1617_v60, -inf  ;;  %v1627_v4 = vld [vmem:[#allocation4 + $0x80] sm:$0xff]  ;;  %v152_v6 = vsel %vm103_vm0, %v1625_v3, -inf  ;;  %v1633_v10 = vld [vmem:[#allocation2 + $0x88] sm:$0xff] }
  0x31   :  { %v277_v63 = vsel %vm103_vm0, %v1619_v61, -inf  ;;  %v280_v7 = vsel %vm103_vm0, %v1627_v4, -inf  ;;  %v1635_v11 = vld [vmem:[#allocation4 + $0x88] sm:$0xff] }
  0x33   :  { %114 = vmax.xlane.f32.xlu0 %v113_v14  ;;  %v155_v14 = vsel %vm103_vm0, %v1633_v10, -inf }
  0x34   :  { %242 = vmax.xlane.f32.xlu1 %v241_v15  ;;  %v283_v15 = vsel %vm103_vm0, %v1635_v11, -inf }
  0x37   :  { %117 = vmax.xlane.f32.xlu0 %v116_v18  ;;  %v1641_v18 = vld [vmem:[#allocation2 + $0x90] sm:$0xff] }
  0x38   :  { %245 = vmax.xlane.f32.xlu1 %v244_v19  ;;  %v1643_v19 = vld [vmem:[#allocation4 + $0x90] sm:$0xff] }
  0x3b   :  { %120 = vmax.xlane.f32.xlu0 %v119_v22  ;;  %v158_v22 = vsel %vm103_vm0, %v1641_v18, -inf }
  0x3c   :  { %248 = vmax.xlane.f32.xlu1 %v247_v23  ;;  %v286_v23 = vsel %vm103_vm0, %v1643_v19, -inf }
  0x3f   :  { %123 = vmax.xlane.f32.xlu0 %v122_v26  ;;  %v1649_v26 = vld [vmem:[#allocation2 + $0x98] sm:$0xff] }
  0x40   :  { %251 = vmax.xlane.f32.xlu1 %v250_v27  ;;  %v1651_v27 = vld [vmem:[#allocation4 + $0x98] sm:$0xff] }
  0x43   :  { %126 = vmax.xlane.f32.xlu0 %v125_v30  ;;  %v161_v30 = vsel %vm103_vm0, %v1649_v26, -inf }
  0x44   :  { %254 = vmax.xlane.f32.xlu1 %v253_v31  ;;  %v289_v31 = vsel %vm103_vm0, %v1651_v27, -inf }
  0x47   :  { %129 = vmax.xlane.f32.xlu0 %v128_v34  ;;  %v1657_v34 = vld [vmem:[#allocation2 + $0xa0] sm:$0xff] }
  0x48   :  { %257 = vmax.xlane.f32.xlu1 %v256_v35  ;;  %v1659_v35 = vld [vmem:[#allocation4 + $0xa0] sm:$0xff] }
  0x4b   :  { %132 = vmax.xlane.f32.xlu0 %v131_v38  ;;  %v164_v38 = vsel %vm103_vm0, %v1657_v34, -inf }
  0x4c   :  { %260 = vmax.xlane.f32.xlu1 %v259_v39  ;;  %v292_v39 = vsel %vm103_vm0, %v1659_v35, -inf }
  0x4f   :  { %135 = vmax.xlane.f32.xlu0 %v134_v42  ;;  %v1665_v42 = vld [vmem:[#allocation2 + $0xa8] sm:$0xff] }
  0x50   :  { %263 = vmax.xlane.f32.xlu1 %v262_v43  ;;  %v1667_v43 = vld [vmem:[#allocation4 + $0xa8] sm:$0xff] }
  0x53   :  { %138 = vmax.xlane.f32.xlu0 %v137_v46  ;;  %v167_v46 = vsel %vm103_vm0, %v1665_v42, -inf }
  0x54   :  { %266 = vmax.xlane.f32.xlu1 %v265_v47  ;;  %v295_v47 = vsel %vm103_vm0, %v1667_v43, -inf }
  0x57   :  { %141 = vmax.xlane.f32.xlu0 %v140_v50  ;;  %v1673_v50 = vld [vmem:[#allocation2 + $0xb0] sm:$0xff] }
  0x58   :  { %269 = vmax.xlane.f32.xlu1 %v268_v51  ;;  %v1675_v51 = vld [vmem:[#allocation4 + $0xb0] sm:$0xff] }
  0x5b   :  { %144 = vmax.xlane.f32.xlu0 %v143_v54  ;;  %v170_v54 = vsel %vm103_vm0, %v1673_v50, -inf }
  0x5c   :  { %272 = vmax.xlane.f32.xlu1 %v271_v55  ;;  %v298_v55 = vsel %vm103_vm0, %v1675_v51, -inf }
  0x5f   :  { %147 = vmax.xlane.f32.xlu0 %v146_v58  ;;  %v1681_v58 = vld [vmem:[#allocation2 + $0xb8] sm:$0xff] }
  0x60   :  { %275 = vmax.xlane.f32.xlu1 %v274_v59  ;;  %v1683_v59 = vld [vmem:[#allocation4 + $0xb8] sm:$0xff] }
  0x63   :  { %150 = vmax.xlane.f32.xlu0 %v149_v62  ;;  %v173_v62 = vsel %vm103_vm0, %v1681_v58, -inf }
  0x64   :  { %278 = vmax.xlane.f32.xlu1 %v277_v63  ;;  %v301_v63 = vsel %vm103_vm0, %v1683_v59, -inf }
  0x67   :  { %153 = vmax.xlane.f32.xlu0 %v152_v6  ;;  %v1689_v6 = vld [vmem:[#allocation2 + $0xc0] sm:$0xff] }
  0x68   :  { %281 = vmax.xlane.f32.xlu1 %v280_v7  ;;  %v1691_v7 = vld [vmem:[#allocation4 + $0xc0] sm:$0xff] }
  0x6b   :  { %156 = vmax.xlane.f32.xlu0 %v155_v14  ;;  %v176_v14 = vsel %vm103_vm0, %v1689_v6, -inf }
  0x6c   :  { %284 = vmax.xlane.f32.xlu1 %v283_v15  ;;  %v304_v15 = vsel %vm103_vm0, %v1691_v7, -inf }
  0x6f   :  { %159 = vmax.xlane.f32.xlu0 %v158_v22  ;;  %v1697_v22 = vld [vmem:[#allocation2 + $0xc8] sm:$0xff] }
  0x70   :  { %287 = vmax.xlane.f32.xlu1 %v286_v23  ;;  %v1699_v23 = vld [vmem:[#allocation4 + $0xc8] sm:$0xff] }
  0x73   :  { %162 = vmax.xlane.f32.xlu0 %v161_v30  ;;  %v179_v30 = vsel %vm103_vm0, %v1697_v22, -inf }
  0x74   :  { %290 = vmax.xlane.f32.xlu1 %v289_v31  ;;  %v307_v31 = vsel %vm103_vm0, %v1699_v23, -inf }
  0x77   :  { %165 = vmax.xlane.f32.xlu0 %v164_v38  ;;  %v1705_v38 = vld [vmem:[#allocation2 + $0xd0] sm:$0xff] }
  0x78   :  { %293 = vmax.xlane.f32.xlu1 %v292_v39  ;;  %2448 = vst [vmem:[#allocation8_spill] sm:$0xff] %v1705_v38  ;;  %v1707_v39 = vld [vmem:[#allocation4 + $0xd0] sm:$0xff] }
  0x79   :  { %2449 = vst [vmem:[#allocation9_spill] sm:$0xff] %v1707_v39 }
  0x7b   :  { %168 = vmax.xlane.f32.xlu0 %v167_v46  ;;  %v182_v46 = vsel %vm103_vm0, %v1705_v38, -inf }
  0x7c   :  { %296 = vmax.xlane.f32.xlu1 %v295_v47  ;;  %v310_v47 = vsel %vm103_vm0, %v1707_v39, -inf }
  0x7f   :  { %171 = vmax.xlane.f32.xlu0 %v170_v54  ;;  %v1713_v54 = vld [vmem:[#allocation2 + $0xd8] sm:$0xff] }
  0x80   :  { %299 = vmax.xlane.f32.xlu1 %v298_v55  ;;  %2450 = vst [vmem:[#allocation10_spill] sm:$0xff] %v1713_v54  ;;  %v1715_v55 = vld [vmem:[#allocation4 + $0xd8] sm:$0xff] }
  0x81   :  { %2451 = vst [vmem:[#allocation11_spill] sm:$0xff] %v1715_v55 }
  0x83   :  { %174 = vmax.xlane.f32.xlu0 %v173_v62  ;;  %v185_v62 = vsel %vm103_vm0, %v1713_v54, -inf }
  0x84   :  { %302 = vmax.xlane.f32.xlu1 %v301_v63  ;;  %v313_v63 = vsel %vm103_vm0, %v1715_v55, -inf }
  0x87   :  { %177 = vmax.xlane.f32.xlu0 %v176_v14  ;;  %v1721_v14 = vld [vmem:[#allocation2 + $0xe0] sm:$0xff] }
  0x88   :  { %305 = vmax.xlane.f32.xlu1 %v304_v15  ;;  %2452 = vst [vmem:[#allocation12_spill] sm:$0xff] %v1721_v14  ;;  %v1723_v15 = vld [vmem:[#allocation4 + $0xe0] sm:$0xff] }
  0x89   :  { %2453 = vst [vmem:[#allocation13_spill] sm:$0xff] %v1723_v15 }
  0x8b   :  { %180 = vmax.xlane.f32.xlu0 %v179_v30  ;;  %v188_v30 = vsel %vm103_vm0, %v1721_v14, -inf }
  0x8c   :  { %308 = vmax.xlane.f32.xlu1 %v307_v31  ;;  %v316_v31 = vsel %vm103_vm0, %v1723_v15, -inf }
  0x8f   :  { %183 = vmax.xlane.f32.xlu0 %v182_v46  ;;  %v1729_v46 = vld [vmem:[#allocation2 + $0xe8] sm:$0xff] }
  0x90   :  { %311 = vmax.xlane.f32.xlu1 %v310_v47  ;;  %2454 = vst [vmem:[#allocation14_spill] sm:$0xff] %v1729_v46  ;;  %v1731_v47 = vld [vmem:[#allocation4 + $0xe8] sm:$0xff]  ;;  %v191_v55 = vsel %vm103_vm0, %v1729_v46, -inf }
  0x91   :  { %2455 = vst [vmem:[#allocation15_spill] sm:$0xff] %v1731_v47  ;;  %v319_v54 = vsel %vm103_vm0, %v1731_v47, -inf }
  0x93   :  { %186 = vmax.xlane.f32.xlu0 %v185_v62  ;;  %v1737_v62 = vld [vmem:[#allocation2 + $0xf0] sm:$0xff] }
  0x94   :  { %314 = vmax.xlane.f32.xlu1 %v313_v63  ;;  %2456 = vst [vmem:[#allocation16_spill] sm:$0xff] %v1737_v62  ;;  %v1739_v63 = vld [vmem:[#allocation4 + $0xf0] sm:$0xff]  ;;  %v194_v15 = vsel %vm103_vm0, %v1737_v62, -inf }
  0x95   :  { %2457 = vst [vmem:[#allocation17_spill] sm:$0xff] %v1739_v63  ;;  %v322_v14 = vsel %vm103_vm0, %v1739_v63, -inf }
  0x97   :  { %189 = vmax.xlane.f32.xlu0 %v188_v30  ;;  %v1745_v30 = vld [vmem:[#allocation2 + $0xf8] sm:$0xff] }
  0x98   :  { %317 = vmax.xlane.f32.xlu1 %v316_v31  ;;  %2458 = vst [vmem:[#allocation18_spill] sm:$0xff] %v1745_v30  ;;  %v1747_v31 = vld [vmem:[#allocation4 + $0xf8] sm:$0xff]  ;;  %v197_v47 = vsel %vm103_vm0, %v1745_v30, -inf }
  0x99   :  { %v325_v46 = vsel %vm103_vm0, %v1747_v31, -inf }
  0x9b   :  { %192 = vmax.xlane.f32.xlu0 %v191_v55 }
  0x9c   :  { %320 = vmax.xlane.f32.xlu1 %v319_v54 }
  0x9f   :  { %195 = vmax.xlane.f32.xlu0 %v194_v15 }
  0xa0   :  { %323 = vmax.xlane.f32.xlu1 %v322_v14 }
  0xa3   :  { %198 = vmax.xlane.f32.xlu0 %v197_v47 }
  0xa4   :  { %326 = vmax.xlane.f32.xlu1 %v325_v46 }
  0xb4   :  { %v106_v54 = vpop.xlane.xlu0 %105 }
  0xb5   :  { %v234_v55 = vpop.xlane.xlu1 %233  ;;  %v1754_v62 = vsub.f32 %v1497_v0, %v106_v54 }
  0xb6   :  { %v1757_v63 = vsub.f32 %v1499_v1, %v234_v55 }
  0xb7   :  { %v360_v39 = vmul.f32 1.442695, %v1754_v62 }
  0xb8   :  { %2459 = vst [vmem:[#allocation19_spill] sm:$0xff] %v1757_v63  ;;  %v424_v14 = vmul.f32 1.442695, %v1757_v63  ;;  %v109_v15 = vpop.xlane.xlu0 %108 }
  0xb9   :  { %v237_v38 = vpop.xlane.xlu1 %236  ;;  %1086 = vpow2.f32 %v360_v39  ;;  %v1762_v30 = vsub.f32 %v1501_v2, %v109_v15 }
  0xba   :  { %v1765_v46 = vsub.f32 %v1507_v5, %v237_v38  ;;  %1088 = vpow2.f32 %v424_v14 }
  0xbb   :  { %v362_v0 = vmul.f32 1.442695, %v1762_v30 }
  0xbc   :  { %v426_v47 = vmul.f32 1.442695, %v1765_v46  ;;  %v112_v1 = vpop.xlane.xlu0 %111 }
  0xbd   :  { %v240_v54 = vpop.xlane.xlu1 %239  ;;  %1090 = vpow2.f32 %v362_v0  ;;  %v1770_v55 = vsub.f32 %v1513_v8, %v112_v1 }
  0xbe   :  { %v1773_v63 = vsub.f32 %v1515_v9, %v240_v54  ;;  %1092 = vpow2.f32 %v426_v47 }
  0xbf   :  { %2460 = vst [vmem:[#allocation20_spill] sm:$0xff] %v1770_v55  ;;  %v364_v2 = vmul.f32 1.442695, %v1770_v55 }
  0xc0   :  { %v428_v5 = vmul.f32 1.442695, %v1773_v63  ;;  %v115_v38 = vpop.xlane.xlu0 %114 }
  0xc1   :  { %v243_v39 = vpop.xlane.xlu1 %242  ;;  %1094 = vpow2.f32 %v364_v2  ;;  %v1778_v14 = vsub.f32 %v1521_v12, %v115_v38 }
  0xc2   :  { %v1781_v15 = vsub.f32 %v1523_v13, %v243_v39  ;;  %1096 = vpow2.f32 %v428_v5 }
  0xc3   :  { %2461 = vst [vmem:[#allocation21_spill] sm:$0xff] %v1778_v14  ;;  %v1783_v8 = vpop.eup %1086  ;;  %v366_v9 = vmul.f32 1.442695, %v1778_v14 }
  0xc4   :  { %2462 = vst [vmem:[#allocation22_spill] sm:$0xff] %v1781_v15  ;;  %v430_v0 = vmul.f32 1.442695, %v1781_v15  ;;  %v1089_v47 = vpop.eup %1088  ;;  %v118_v1 = vpop.xlane.xlu0 %117  ;;  %v488_v54 = vsel %vm103_vm0, %v1783_v8, 0.0 }
  0xc5   :  { %v246_v55 = vpop.xlane.xlu1 %245  ;;  %1098 = vpow2.f32 %v366_v9  ;;  %v1790_v12 = vsub.f32 %v1529_v16, %v118_v1  ;;  %489 = vadd.xlane.f32.xlu0 %v488_v54  ;;  %v584_v2 = vsel %vm103_vm0, %v1089_v47, 0.0 }
  0xc6   :  { %v1793_v13 = vsub.f32 %v1531_v17, %v246_v55  ;;  %1100 = vpow2.f32 %v430_v0 }
  0xc7   :  { %2463 = vst [vmem:[#allocation23_spill] sm:$0xff] %v1790_v12  ;;  %v1796_v5 = vpop.eup %1090  ;;  %v368_v38 = vmul.f32 1.442695, %v1790_v12 }
  0xc8   :  { %2464 = vst [vmem:[#allocation24_spill] sm:$0xff] %v1793_v13  ;;  %v432_v39 = vmul.f32 1.442695, %v1793_v13  ;;  %v1093_v14 = vpop.eup %1092  ;;  %v121_v15 = vpop.xlane.xlu0 %120  ;;  %v491_v9 = vsel %vm103_vm0, %v1796_v5, 0.0 }
  0xc9   :  { %v249_v16 = vpop.xlane.xlu1 %248  ;;  %1102 = vpow2.f32 %v368_v38  ;;  %v1803_v1 = vsub.f32 %v1537_v20, %v121_v15  ;;  %585 = vadd.xlane.f32.xlu0 %v584_v2  ;;  %492 = vadd.xlane.f32.xlu1 %v491_v9  ;;  %v587_v55 = vsel %vm103_vm0, %v1093_v14, 0.0 }
  0xca   :  { %v1806_v17 = vsub.f32 %v1539_v21, %v249_v16  ;;  %1104 = vpow2.f32 %v432_v39 }
  0xcb   :  { %2465 = vst [vmem:[#allocation25_spill] sm:$0xff] %v1803_v1  ;;  %v1809_v0 = vpop.eup %1094  ;;  %v370_v47 = vmul.f32 1.442695, %v1803_v1 }
  0xcc   :  { %v434_v54 = vmul.f32 1.442695, %v1806_v17  ;;  %v1097_v12 = vpop.eup %1096  ;;  %v124_v13 = vpop.xlane.xlu0 %123  ;;  %v494_v20 = vsel %vm103_vm0, %v1809_v0, 0.0 }
  0xcd   :  { %v252_v15 = vpop.xlane.xlu1 %251  ;;  %1106 = vpow2.f32 %v370_v47  ;;  %v1816_v2 = vsub.f32 %v1545_v24, %v124_v13  ;;  %588 = vadd.xlane.f32.xlu1 %v587_v55  ;;  %495 = vadd.xlane.f32.xlu0 %v494_v20  ;;  %v590_v14 = vsel %vm103_vm0, %v1097_v12, 0.0 }
  0xce   :  { %v1819_v21 = vsub.f32 %v1547_v25, %v252_v15  ;;  %1108 = vpow2.f32 %v434_v54 }
  0xcf   :  { %2466 = vst [vmem:[#allocation26_spill] sm:$0xff] %v1816_v2  ;;  %v1822_v38 = vpop.eup %1098  ;;  %v372_v39 = vmul.f32 1.442695, %v1816_v2 }
  0xd0   :  { %v436_v9 = vmul.f32 1.442695, %v1819_v21  ;;  %v1101_v16 = vpop.eup %1100  ;;  %v127_v1 = vpop.xlane.xlu0 %126  ;;  %v497_v24 = vsel %vm103_vm0, %v1822_v38, 0.0 }
  0xd1   :  { %v255_v13 = vpop.xlane.xlu1 %254  ;;  %1110 = vpow2.f32 %v372_v39  ;;  %v1829_v55 = vsub.f32 %v1553_v28, %v127_v1  ;;  %591 = vadd.xlane.f32.xlu1 %v590_v14  ;;  %498 = vadd.xlane.f32.xlu0 %v497_v24  ;;  %v593_v12 = vsel %vm103_vm0, %v1101_v16, 0.0 }
  0xd2   :  { %v1832_v25 = vsub.f32 %v1555_v29, %v255_v13  ;;  %1112 = vpow2.f32 %v436_v9 }
  0xd3   :  { %2467 = vst [vmem:[#allocation27_spill] sm:$0xff] %v1829_v55  ;;  %v1835_v47 = vpop.eup %1102  ;;  %v374_v54 = vmul.f32 1.442695, %v1829_v55 }
  0xd4   :  { %v438_v20 = vmul.f32 1.442695, %v1832_v25  ;;  %v1105_v15 = vpop.eup %1104  ;;  %v130_v2 = vpop.xlane.xlu0 %129  ;;  %v500_v28 = vsel %vm103_vm0, %v1835_v47, 0.0 }
  0xd5   :  { %v258_v1 = vpop.xlane.xlu1 %257  ;;  %1114 = vpow2.f32 %v374_v54  ;;  %v1842_v14 = vsub.f32 %v1561_v32, %v130_v2  ;;  %594 = vadd.xlane.f32.xlu1 %v593_v12  ;;  %501 = vadd.xlane.f32.xlu0 %v500_v28  ;;  %v596_v39 = vsel %vm103_vm0, %v1105_v15, 0.0 }
  0xd6   :  { %v1845_v29 = vsub.f32 %v1563_v33, %v258_v1  ;;  %1116 = vpow2.f32 %v438_v20 }
  0xd7   :  { %2468 = vst [vmem:[#allocation28_spill] sm:$0xff] %v1842_v14  ;;  %v1848_v9 = vpop.eup %1106  ;;  %v376_v16 = vmul.f32 1.442695, %v1842_v14 }
  0xd8   :  { %v440_v24 = vmul.f32 1.442695, %v1845_v29  ;;  %v1109_v13 = vpop.eup %1108  ;;  %v133_v55 = vpop.xlane.xlu0 %132  ;;  %v503_v32 = vsel %vm103_vm0, %v1848_v9, 0.0 }
  0xd9   :  { %v261_v2 = vpop.xlane.xlu1 %260  ;;  %1118 = vpow2.f32 %v376_v16  ;;  %v1855_v12 = vsub.f32 %v1569_v36, %v133_v55  ;;  %597 = vadd.xlane.f32.xlu1 %v596_v39  ;;  %504 = vadd.xlane.f32.xlu0 %v503_v32  ;;  %v599_v54 = vsel %vm103_vm0, %v1109_v13, 0.0 }
  0xda   :  { %v1858_v33 = vsub.f32 %v1571_v37, %v261_v2  ;;  %1120 = vpow2.f32 %v440_v24 }
  0xdb   :  { %2469 = vst [vmem:[#allocation29_spill] sm:$0xff] %v1855_v12  ;;  %v1861_v20 = vpop.eup %1110  ;;  %v378_v15 = vmul.f32 1.442695, %v1855_v12 }
  0xdc   :  { %v442_v28 = vmul.f32 1.442695, %v1858_v33  ;;  %v1113_v1 = vpop.eup %1112  ;;  %v136_v14 = vpop.xlane.xlu0 %135  ;;  %v506_v36 = vsel %vm103_vm0, %v1861_v20, 0.0 }
  0xdd   :  { %v264_v55 = vpop.xlane.xlu1 %263  ;;  %1122 = vpow2.f32 %v378_v15  ;;  %v1868_v39 = vsub.f32 %v1577_v40, %v136_v14  ;;  %600 = vadd.xlane.f32.xlu1 %v599_v54  ;;  %507 = vadd.xlane.f32.xlu0 %v506_v36  ;;  %v602_v16 = vsel %vm103_vm0, %v1113_v1, 0.0 }
  0xde   :  { %v1871_v37 = vsub.f32 %v1579_v41, %v264_v55  ;;  %1124 = vpow2.f32 %v442_v28 }
  0xdf   :  { %2470 = vst [vmem:[#allocation30_spill] sm:$0xff] %v1868_v39  ;;  %v1874_v24 = vpop.eup %1114  ;;  %v380_v13 = vmul.f32 1.442695, %v1868_v39 }
  0xe0   :  { %v444_v32 = vmul.f32 1.442695, %v1871_v37  ;;  %v1117_v2 = vpop.eup %1116  ;;  %v139_v12 = vpop.xlane.xlu0 %138  ;;  %v509_v40 = vsel %vm103_vm0, %v1874_v24, 0.0 }
  0xe1   :  { %v267_v14 = vpop.xlane.xlu1 %266  ;;  %1126 = vpow2.f32 %v380_v13  ;;  %v1881_v54 = vsub.f32 %v1585_v44, %v139_v12  ;;  %603 = vadd.xlane.f32.xlu1 %v602_v16  ;;  %510 = vadd.xlane.f32.xlu0 %v509_v40  ;;  %v605_v15 = vsel %vm103_vm0, %v1117_v2, 0.0 }
  0xe2   :  { %v1884_v41 = vsub.f32 %v1587_v45, %v267_v14  ;;  %1128 = vpow2.f32 %v444_v32 }
  0xe3   :  { %2471 = vst [vmem:[#allocation31_spill] sm:$0xff] %v1881_v54  ;;  %v1887_v28 = vpop.eup %1118  ;;  %v382_v1 = vmul.f32 1.442695, %v1881_v54 }
  0xe4   :  { %v446_v36 = vmul.f32 1.442695, %v1884_v41  ;;  %v1121_v55 = vpop.eup %1120  ;;  %v142_v39 = vpop.xlane.xlu0 %141  ;;  %v512_v44 = vsel %vm103_vm0, %v1887_v28, 0.0 }
  0xe5   :  { %v270_v12 = vpop.xlane.xlu1 %269  ;;  %1130 = vpow2.f32 %v382_v1  ;;  %v1894_v16 = vsub.f32 %v1593_v48, %v142_v39  ;;  %606 = vadd.xlane.f32.xlu1 %v605_v15  ;;  %513 = vadd.xlane.f32.xlu0 %v512_v44  ;;  %v608_v13 = vsel %vm103_vm0, %v1121_v55, 0.0 }
  0xe6   :  { %v1897_v45 = vsub.f32 %v1595_v49, %v270_v12  ;;  %1132 = vpow2.f32 %v446_v36 }
  0xe7   :  { %2472 = vst [vmem:[#allocation32_spill] sm:$0xff] %v1894_v16  ;;  %v1900_v32 = vpop.eup %1122  ;;  %v384_v2 = vmul.f32 1.442695, %v1894_v16 }
  0xe8   :  { %v448_v40 = vmul.f32 1.442695, %v1897_v45  ;;  %v1125_v14 = vpop.eup %1124  ;;  %v145_v54 = vpop.xlane.xlu0 %144  ;;  %v515_v48 = vsel %vm103_vm0, %v1900_v32, 0.0 }
  0xe9   :  { %v273_v39 = vpop.xlane.xlu1 %272  ;;  %1134 = vpow2.f32 %v384_v2  ;;  %v1907_v15 = vsub.f32 %v1601_v52, %v145_v54  ;;  %609 = vadd.xlane.f32.xlu1 %v608_v13  ;;  %516 = vadd.xlane.f32.xlu0 %v515_v48  ;;  %v611_v1 = vsel %vm103_vm0, %v1125_v14, 0.0 }
  0xea   :  { %v1910_v49 = vsub.f32 %v1603_v53, %v273_v39  ;;  %1136 = vpow2.f32 %v448_v40 }
  0xeb   :  { %2473 = vst [vmem:[#allocation33_spill] sm:$0xff] %v1907_v15  ;;  %v1913_v36 = vpop.eup %1126  ;;  %v386_v55 = vmul.f32 1.442695, %v1907_v15 }
  0xec   :  { %v450_v44 = vmul.f32 1.442695, %v1910_v49  ;;  %v1129_v12 = vpop.eup %1128  ;;  %v148_v16 = vpop.xlane.xlu0 %147  ;;  %v518_v52 = vsel %vm103_vm0, %v1913_v36, 0.0 }
  0xed   :  { %v276_v54 = vpop.xlane.xlu1 %275  ;;  %1138 = vpow2.f32 %v386_v55  ;;  %v1920_v13 = vsub.f32 %v1609_v56, %v148_v16  ;;  %612 = vadd.xlane.f32.xlu1 %v611_v1  ;;  %519 = vadd.xlane.f32.xlu0 %v518_v52  ;;  %v614_v2 = vsel %vm103_vm0, %v1129_v12, 0.0 }
  0xee   :  { %v1923_v53 = vsub.f32 %v1611_v57, %v276_v54  ;;  %1140 = vpow2.f32 %v450_v44 }
  0xef   :  { %2474 = vst [vmem:[#allocation34_spill] sm:$0xff] %v1920_v13  ;;  %v1926_v40 = vpop.eup %1130  ;;  %v388_v14 = vmul.f32 1.442695, %v1920_v13 }
  0xf0   :  { %v452_v48 = vmul.f32 1.442695, %v1923_v53  ;;  %v1133_v39 = vpop.eup %1132  ;;  %v151_v15 = vpop.xlane.xlu0 %150  ;;  %v521_v56 = vsel %vm103_vm0, %v1926_v40, 0.0 }
  0xf1   :  { %v279_v16 = vpop.xlane.xlu1 %278  ;;  %1142 = vpow2.f32 %v388_v14  ;;  %v1933_v1 = vsub.f32 %v1617_v60, %v151_v15  ;;  %615 = vadd.xlane.f32.xlu1 %v614_v2  ;;  %522 = vadd.xlane.f32.xlu0 %v521_v56  ;;  %v617_v55 = vsel %vm103_vm0, %v1133_v39, 0.0 }
  0xf2   :  { %v1936_v57 = vsub.f32 %v1619_v61, %v279_v16  ;;  %1144 = vpow2.f32 %v452_v48 }
  0xf3   :  { %2475 = vst [vmem:[#allocation35_spill] sm:$0xff] %v1933_v1  ;;  %v1939_v44 = vpop.eup %1134  ;;  %v390_v12 = vmul.f32 1.442695, %v1933_v1 }
  0xf4   :  { %v454_v52 = vmul.f32 1.442695, %v1936_v57  ;;  %v1137_v54 = vpop.eup %1136  ;;  %v154_v13 = vpop.xlane.xlu0 %153  ;;  %v524_v60 = vsel %vm103_vm0, %v1939_v44, 0.0 }
  0xf5   :  { %v282_v15 = vpop.xlane.xlu1 %281  ;;  %1146 = vpow2.f32 %v390_v12  ;;  %v1946_v2 = vsub.f32 %v1625_v3, %v154_v13  ;;  %618 = vadd.xlane.f32.xlu1 %v617_v55  ;;  %525 = vadd.xlane.f32.xlu0 %v524_v60  ;;  %v620_v14 = vsel %vm103_vm0, %v1137_v54, 0.0 }
  0xf6   :  { %v1949_v61 = vsub.f32 %v1627_v4, %v282_v15  ;;  %1148 = vpow2.f32 %v454_v52 }
  0xf7   :  { %2476 = vst [vmem:[#allocation36_spill] sm:$0xff] %v1946_v2  ;;  %v1952_v48 = vpop.eup %1138  ;;  %v392_v39 = vmul.f32 1.442695, %v1946_v2 }
  0xf8   :  { %v456_v56 = vmul.f32 1.442695, %v1949_v61  ;;  %v1141_v16 = vpop.eup %1140  ;;  %v157_v1 = vpop.xlane.xlu0 %156  ;;  %v527_v3 = vsel %vm103_vm0, %v1952_v48, 0.0 }
  0xf9   :  { %v285_v13 = vpop.xlane.xlu1 %284  ;;  %1150 = vpow2.f32 %v392_v39  ;;  %v1959_v55 = vsub.f32 %v1633_v10, %v157_v1  ;;  %621 = vadd.xlane.f32.xlu1 %v620_v14  ;;  %528 = vadd.xlane.f32.xlu0 %v527_v3  ;;  %v623_v12 = vsel %vm103_vm0, %v1141_v16, 0.0 }
  0xfa   :  { %v1962_v4 = vsub.f32 %v1635_v11, %v285_v13  ;;  %1152 = vpow2.f32 %v456_v56 }
  0xfb   :  { %2477 = vst [vmem:[#allocation37_spill] sm:$0xff] %v1959_v55  ;;  %v1965_v52 = vpop.eup %1142  ;;  %v394_v54 = vmul.f32 1.442695, %v1959_v55 }
  0xfc   :  { %v458_v60 = vmul.f32 1.442695, %v1962_v4  ;;  %v1145_v15 = vpop.eup %1144  ;;  %v160_v2 = vpop.xlane.xlu0 %159  ;;  %v530_v10 = vsel %vm103_vm0, %v1965_v52, 0.0 }
  0xfd   :  { %v288_v1 = vpop.xlane.xlu1 %287  ;;  %1154 = vpow2.f32 %v394_v54  ;;  %v1972_v14 = vsub.f32 %v1641_v18, %v160_v2  ;;  %624 = vadd.xlane.f32.xlu1 %v623_v12  ;;  %531 = vadd.xlane.f32.xlu0 %v530_v10  ;;  %v626_v39 = vsel %vm103_vm0, %v1145_v15, 0.0 }
  0xfe   :  { %v1975_v11 = vsub.f32 %v1643_v19, %v288_v1  ;;  %1156 = vpow2.f32 %v458_v60 }
  0xff   :  { %2478 = vst [vmem:[#allocation38_spill] sm:$0xff] %v1972_v14  ;;  %v1978_v56 = vpop.eup %1146  ;;  %v396_v16 = vmul.f32 1.442695, %v1972_v14 }
 0x100   :  { %v460_v3 = vmul.f32 1.442695, %v1975_v11  ;;  %v1149_v13 = vpop.eup %1148  ;;  %v163_v55 = vpop.xlane.xlu0 %162  ;;  %v533_v18 = vsel %vm103_vm0, %v1978_v56, 0.0 }
 0x101   :  { %v291_v2 = vpop.xlane.xlu1 %290  ;;  %1158 = vpow2.f32 %v396_v16  ;;  %v1985_v12 = vsub.f32 %v1649_v26, %v163_v55  ;;  %627 = vadd.xlane.f32.xlu1 %v626_v39  ;;  %534 = vadd.xlane.f32.xlu0 %v533_v18  ;;  %v629_v54 = vsel %vm103_vm0, %v1149_v13, 0.0 }
 0x102   :  { %v1988_v19 = vsub.f32 %v1651_v27, %v291_v2  ;;  %1160 = vpow2.f32 %v460_v3 }
 0x103   :  { %2479 = vst [vmem:[#allocation39_spill] sm:$0xff] %v1985_v12  ;;  %v1991_v60 = vpop.eup %1150  ;;  %v398_v15 = vmul.f32 1.442695, %v1985_v12 }
 0x104   :  { %2480 = vst [vmem:[#allocation40_spill] sm:$0xff] %v1988_v19  ;;  %v462_v10 = vmul.f32 1.442695, %v1988_v19  ;;  %v1153_v1 = vpop.eup %1152  ;;  %v166_v14 = vpop.xlane.xlu0 %165  ;;  %v536_v26 = vsel %vm103_vm0, %v1991_v60, 0.0  ;;  %v2534_v19 = vld [vmem:[#allocation21_spill] sm:$0xff] }
 0x105   :  { %v294_v55 = vpop.xlane.xlu1 %293  ;;  %1162 = vpow2.f32 %v398_v15  ;;  %v1998_v39 = vsub.f32 %v1657_v34, %v166_v14  ;;  %630 = vadd.xlane.f32.xlu1 %v629_v54  ;;  %537 = vadd.xlane.f32.xlu0 %v536_v26  ;;  %v632_v16 = vsel %vm103_vm0, %v1153_v1, 0.0 }
 0x106   :  { %v2001_v27 = vsub.f32 %v1659_v35, %v294_v55  ;;  %1164 = vpow2.f32 %v462_v10 }
 0x107   :  { %2481 = vst [vmem:[#allocation41_spill] sm:$0xff] %v1998_v39  ;;  %v2004_v3 = vpop.eup %1154  ;;  %v400_v13 = vmul.f32 1.442695, %v1998_v39 }
 0x108   :  { %2482 = vst [vmem:[#allocation42_spill] sm:$0xff] %v2001_v27  ;;  %2483 = vst [vmem:[#allocation43_spill] sm:$0xff] %v2004_v3  ;;  %v464_v18 = vmul.f32 1.442695, %v2001_v27  ;;  %v1157_v2 = vpop.eup %1156  ;;  %v169_v12 = vpop.xlane.xlu0 %168  ;;  %v539_v34 = vsel %vm103_vm0, %v2004_v3, 0.0 }
 0x109   :  { %v297_v14 = vpop.xlane.xlu1 %296  ;;  %1166 = vpow2.f32 %v400_v13  ;;  %v2011_v54 = vsub.f32 %v1665_v42, %v169_v12  ;;  %633 = vadd.xlane.f32.xlu1 %v632_v16  ;;  %540 = vadd.xlane.f32.xlu0 %v539_v34  ;;  %v635_v15 = vsel %vm103_vm0, %v1157_v2, 0.0 }
 0x10a   :  { %v2014_v35 = vsub.f32 %v1667_v43, %v297_v14  ;;  %1168 = vpow2.f32 %v464_v18 }
 0x10b   :  { %2484 = vst [vmem:[#allocation44_spill] sm:$0xff] %v2011_v54  ;;  %v2017_v10 = vpop.eup %1158  ;;  %v402_v1 = vmul.f32 1.442695, %v2011_v54 }
 0x10c   :  { %2485 = vst [vmem:[#allocation45_spill] sm:$0xff] %v2014_v35  ;;  %2486 = vst [vmem:[#allocation46_spill] sm:$0xff] %v2017_v10  ;;  %v466_v26 = vmul.f32 1.442695, %v2014_v35  ;;  %v1161_v55 = vpop.eup %1160  ;;  %v172_v39 = vpop.xlane.xlu0 %171  ;;  %v542_v42 = vsel %vm103_vm0, %v2017_v10, 0.0 }
 0x10d   :  { %v300_v12 = vpop.xlane.xlu1 %299  ;;  %1170 = vpow2.f32 %v402_v1  ;;  %v2024_v16 = vsub.f32 %v1673_v50, %v172_v39  ;;  %636 = vadd.xlane.f32.xlu1 %v635_v15  ;;  %543 = vadd.xlane.f32.xlu0 %v542_v42  ;;  %v638_v13 = vsel %vm103_vm0, %v1161_v55, 0.0 }
 0x10e   :  { %v2027_v43 = vsub.f32 %v1675_v51, %v300_v12  ;;  %1172 = vpow2.f32 %v466_v26 }
 0x10f   :  { %2487 = vst [vmem:[#allocation47_spill] sm:$0xff] %v2024_v16  ;;  %v2030_v18 = vpop.eup %1162  ;;  %v404_v2 = vmul.f32 1.442695, %v2024_v16 }
 0x110   :  { %2488 = vst [vmem:[#allocation48_spill] sm:$0xff] %v2027_v43  ;;  %2489 = vst [vmem:[#allocation49_spill] sm:$0xff] %v2030_v18  ;;  %v468_v34 = vmul.f32 1.442695, %v2027_v43  ;;  %v1165_v14 = vpop.eup %1164  ;;  %v175_v54 = vpop.xlane.xlu0 %174  ;;  %v545_v50 = vsel %vm103_vm0, %v2030_v18, 0.0 }
 0x111   :  { %v303_v39 = vpop.xlane.xlu1 %302  ;;  %1174 = vpow2.f32 %v404_v2  ;;  %v2037_v15 = vsub.f32 %v1681_v58, %v175_v54  ;;  %639 = vadd.xlane.f32.xlu1 %v638_v13  ;;  %546 = vadd.xlane.f32.xlu0 %v545_v50  ;;  %v641_v1 = vsel %vm103_vm0, %v1165_v14, 0.0 }
 0x112   :  { %v2040_v51 = vsub.f32 %v1683_v59, %v303_v39  ;;  %1176 = vpow2.f32 %v468_v34 }
 0x113   :  { %2490 = vst [vmem:[#allocation50_spill] sm:$0xff] %v2037_v15  ;;  %v2043_v26 = vpop.eup %1166  ;;  %v406_v55 = vmul.f32 1.442695, %v2037_v15 }
 0x114   :  { %2491 = vst [vmem:[#allocation51_spill] sm:$0xff] %v2040_v51  ;;  %2492 = vst [vmem:[#allocation52_spill] sm:$0xff] %v2043_v26  ;;  %v470_v42 = vmul.f32 1.442695, %v2040_v51  ;;  %v1169_v12 = vpop.eup %1168  ;;  %v178_v16 = vpop.xlane.xlu0 %177  ;;  %v548_v58 = vsel %vm103_vm0, %v2043_v26, 0.0 }
 0x115   :  { %v306_v54 = vpop.xlane.xlu1 %305  ;;  %1178 = vpow2.f32 %v406_v55  ;;  %v2050_v13 = vsub.f32 %v1689_v6, %v178_v16  ;;  %642 = vadd.xlane.f32.xlu1 %v641_v1  ;;  %549 = vadd.xlane.f32.xlu0 %v548_v58  ;;  %v644_v2 = vsel %vm103_vm0, %v1169_v12, 0.0 }
 0x116   :  { %v2053_v59 = vsub.f32 %v1691_v7, %v306_v54  ;;  %1180 = vpow2.f32 %v470_v42 }
 0x117   :  { %2493 = vst [vmem:[#allocation53_spill] sm:$0xff] %v2050_v13  ;;  %v2056_v34 = vpop.eup %1170  ;;  %v408_v14 = vmul.f32 1.442695, %v2050_v13 }
 0x118   :  { %2494 = vst [vmem:[#allocation54_spill] sm:$0xff] %v2053_v59  ;;  %2495 = vst [vmem:[#allocation55_spill] sm:$0xff] %v2056_v34  ;;  %v472_v50 = vmul.f32 1.442695, %v2053_v59  ;;  %v1173_v39 = vpop.eup %1172  ;;  %v181_v15 = vpop.xlane.xlu0 %180  ;;  %v551_v6 = vsel %vm103_vm0, %v2056_v34, 0.0 }
 0x119   :  { %v309_v16 = vpop.xlane.xlu1 %308  ;;  %1182 = vpow2.f32 %v408_v14  ;;  %v2063_v1 = vsub.f32 %v1697_v22, %v181_v15  ;;  %645 = vadd.xlane.f32.xlu1 %v644_v2  ;;  %552 = vadd.xlane.f32.xlu0 %v551_v6  ;;  %v647_v55 = vsel %vm103_vm0, %v1173_v39, 0.0  ;;  %v2499_v2 = vld [vmem:[#allocation8_spill] sm:$0xff] }
 0x11a   :  { %v2066_v7 = vsub.f32 %v1699_v23, %v309_v16  ;;  %1184 = vpow2.f32 %v472_v50  ;;  %v2501_v23 = vld [vmem:[#allocation9_spill] sm:$0xff] }
 0x11b   :  { %2496 = vst [vmem:[#allocation56_spill] sm:$0xff] %v2063_v1  ;;  %v2069_v42 = vpop.eup %1174  ;;  %v410_v12 = vmul.f32 1.442695, %v2063_v1 }
 0x11c   :  { %2497 = vst [vmem:[#allocation57_spill] sm:$0xff] %v2066_v7  ;;  %2498 = vst [vmem:[#allocation58_spill] sm:$0xff] %v2069_v42  ;;  %v474_v58 = vmul.f32 1.442695, %v2066_v7  ;;  %v1177_v54 = vpop.eup %1176  ;;  %v184_v13 = vpop.xlane.xlu0 %183  ;;  %v554_v22 = vsel %vm103_vm0, %v2069_v42, 0.0 }
 0x11d   :  { %v312_v15 = vpop.xlane.xlu1 %311  ;;  %1186 = vpow2.f32 %v410_v12  ;;  %v2076_v14 = vsub.f32 %v2499_v2, %v184_v13  ;;  %648 = vadd.xlane.f32.xlu1 %v647_v55  ;;  %555 = vadd.xlane.f32.xlu0 %v554_v22  ;;  %v650_v39 = vsel %vm103_vm0, %v1177_v54, 0.0  ;;  %v2504_v55 = vld [vmem:[#allocation10_spill] sm:$0xff] }
 0x11e   :  { %v2079_v50 = vsub.f32 %v2501_v23, %v312_v15  ;;  %1188 = vpow2.f32 %v474_v58  ;;  %v2506_v58 = vld [vmem:[#allocation11_spill] sm:$0xff] }
 0x11f   :  { %2500 = vst [vmem:[#allocation8_spill] sm:$0xff] %v2076_v14  ;;  %v2082_v6 = vpop.eup %1178  ;;  %v412_v16 = vmul.f32 1.442695, %v2076_v14 }
 0x120   :  { %2502 = vst [vmem:[#allocation9_spill] sm:$0xff] %v2079_v50  ;;  %2503 = vst [vmem:[#allocation59_spill] sm:$0xff] %v2082_v6  ;;  %v476_v1 = vmul.f32 1.442695, %v2079_v50  ;;  %v1181_v7 = vpop.eup %1180  ;;  %v187_v59 = vpop.xlane.xlu0 %186  ;;  %v557_v13 = vsel %vm103_vm0, %v2082_v6, 0.0 }
 0x121   :  { %v315_v12 = vpop.xlane.xlu1 %314  ;;  %1190 = vpow2.f32 %v412_v16  ;;  %v2089_v22 = vsub.f32 %v2504_v55, %v187_v59  ;;  %651 = vadd.xlane.f32.xlu1 %v650_v39  ;;  %558 = vadd.xlane.f32.xlu0 %v557_v13  ;;  %v653_v15 = vsel %vm103_vm0, %v1181_v7, 0.0  ;;  %v2509_v39 = vld [vmem:[#allocation12_spill] sm:$0xff] }
 0x122   :  { %v2092_v54 = vsub.f32 %v2506_v58, %v315_v12  ;;  %1192 = vpow2.f32 %v476_v1  ;;  %v2511_v1 = vld [vmem:[#allocation13_spill] sm:$0xff] }
 0x123   :  { %2505 = vst [vmem:[#allocation10_spill] sm:$0xff] %v2089_v22  ;;  %v2095_v2 = vpop.eup %1182  ;;  %v414_v23 = vmul.f32 1.442695, %v2089_v22 }
 0x124   :  { %2507 = vst [vmem:[#allocation11_spill] sm:$0xff] %v2092_v54  ;;  %2508 = vst [vmem:[#allocation60_spill] sm:$0xff] %v2095_v2  ;;  %v478_v14 = vmul.f32 1.442695, %v2092_v54  ;;  %v1185_v50 = vpop.eup %1184  ;;  %v190_v6 = vpop.xlane.xlu0 %189  ;;  %v560_v59 = vsel %vm103_vm0, %v2095_v2, 0.0 }
 0x125   :  { %v318_v16 = vpop.xlane.xlu1 %317  ;;  %1194 = vpow2.f32 %v414_v23  ;;  %v2102_v13 = vsub.f32 %v2509_v39, %v190_v6  ;;  %654 = vadd.xlane.f32.xlu1 %v653_v15  ;;  %561 = vadd.xlane.f32.xlu0 %v560_v59  ;;  %v656_v12 = vsel %vm103_vm0, %v1185_v50, 0.0  ;;  %v2514_v15 = vld [vmem:[#allocation14_spill] sm:$0xff] }
 0x126   :  { %v2105_v7 = vsub.f32 %v2511_v1, %v318_v16  ;;  %1196 = vpow2.f32 %v478_v14  ;;  %v2516_v14 = vld [vmem:[#allocation15_spill] sm:$0xff] }
 0x127   :  { %2510 = vst [vmem:[#allocation12_spill] sm:$0xff] %v2102_v13  ;;  %v2108_v55 = vpop.eup %1186  ;;  %v416_v58 = vmul.f32 1.442695, %v2102_v13 }
 0x128   :  { %2512 = vst [vmem:[#allocation13_spill] sm:$0xff] %v2105_v7  ;;  %2513 = vst [vmem:[#allocation61_spill] sm:$0xff] %v2108_v55  ;;  %v480_v22 = vmul.f32 1.442695, %v2105_v7  ;;  %v1189_v54 = vpop.eup %1188  ;;  %v193_v2 = vpop.xlane.xlu0 %192  ;;  %v563_v6 = vsel %vm103_vm0, %v2108_v55, 0.0 }
 0x129   :  { %v321_v23 = vpop.xlane.xlu1 %320  ;;  %1198 = vpow2.f32 %v416_v58  ;;  %v2115_v59 = vsub.f32 %v2514_v15, %v193_v2  ;;  %657 = vadd.xlane.f32.xlu1 %v656_v12  ;;  %564 = vadd.xlane.f32.xlu0 %v563_v6  ;;  %v659_v16 = vsel %vm103_vm0, %v1189_v54, 0.0  ;;  %v2519_v12 = vld [vmem:[#allocation16_spill] sm:$0xff] }
 0x12a   :  { %v2118_v50 = vsub.f32 %v2516_v14, %v321_v23  ;;  %1200 = vpow2.f32 %v480_v22  ;;  %v2521_v22 = vld [vmem:[#allocation17_spill] sm:$0xff] }
 0x12b   :  { %2515 = vst [vmem:[#allocation14_spill] sm:$0xff] %v2115_v59  ;;  %v2121_v39 = vpop.eup %1190  ;;  %v418_v1 = vmul.f32 1.442695, %v2115_v59 }
 0x12c   :  { %2517 = vst [vmem:[#allocation15_spill] sm:$0xff] %v2118_v50  ;;  %2518 = vst [vmem:[#allocation62_spill] sm:$0xff] %v2121_v39  ;;  %v482_v7 = vmul.f32 1.442695, %v2118_v50  ;;  %v1193_v13 = vpop.eup %1192  ;;  %v196_v55 = vpop.xlane.xlu0 %195  ;;  %v566_v2 = vsel %vm103_vm0, %v2121_v39, 0.0 }
 0x12d   :  { %v324_v58 = vpop.xlane.xlu1 %323  ;;  %1202 = vpow2.f32 %v418_v1  ;;  %v2128_v6 = vsub.f32 %v2519_v12, %v196_v55  ;;  %660 = vadd.xlane.f32.xlu1 %v659_v16  ;;  %567 = vadd.xlane.f32.xlu0 %v566_v2  ;;  %v662_v23 = vsel %vm103_vm0, %v1193_v13, 0.0  ;;  %v2524_v16 = vld [vmem:[#allocation18_spill] sm:$0xff] }
 0x12e   :  { %v2131_v54 = vsub.f32 %v2521_v22, %v324_v58  ;;  %1204 = vpow2.f32 %v482_v7 }
 0x12f   :  { %2520 = vst [vmem:[#allocation16_spill] sm:$0xff] %v2128_v6  ;;  %v2134_v15 = vpop.eup %1194  ;;  %v420_v14 = vmul.f32 1.442695, %v2128_v6 }
 0x130   :  { %2522 = vst [vmem:[#allocation17_spill] sm:$0xff] %v2131_v54  ;;  %2523 = vst [vmem:[#allocation63_spill] sm:$0xff] %v2134_v15  ;;  %v484_v50 = vmul.f32 1.442695, %v2131_v54  ;;  %v1197_v59 = vpop.eup %1196  ;;  %v199_v39 = vpop.xlane.xlu0 %198  ;;  %v569_v55 = vsel %vm103_vm0, %v2134_v15, 0.0 }
 0x131   :  { %v327_v1 = vpop.xlane.xlu1 %326  ;;  %1206 = vpow2.f32 %v420_v14  ;;  %v2141_v2 = vsub.f32 %v2524_v16, %v199_v39  ;;  %663 = vadd.xlane.f32.xlu1 %v662_v23  ;;  %570 = vadd.xlane.f32.xlu0 %v569_v55  ;;  %v665_v7 = vsel %vm103_vm0, %v1197_v59, 0.0 }
 0x132   :  { %v2144_v13 = vsub.f32 %v1747_v31, %v327_v1  ;;  %1208 = vpow2.f32 %v484_v50 }
 0x133   :  { %2525 = vst [vmem:[#allocation18_spill] sm:$0xff] %v2141_v2  ;;  %v2147_v58 = vpop.eup %1198  ;;  %v422_v12 = vmul.f32 1.442695, %v2141_v2 }
 0x134   :  { %2526 = vst [vmem:[#allocation64_spill] sm:$0xff] %v2144_v13  ;;  %2527 = vst [vmem:[#allocation65_spill] sm:$0xff] %v2147_v58  ;;  %v486_v22 = vmul.f32 1.442695, %v2144_v13  ;;  %v1201_v54 = vpop.eup %1200  ;;  %v572_v14 = vsel %vm103_vm0, %v2147_v58, 0.0 }
 0x135   :  { %1210 = vpow2.f32 %v422_v12  ;;  %666 = vadd.xlane.f32.xlu1 %v665_v7  ;;  %573 = vadd.xlane.f32.xlu0 %v572_v14  ;;  %v668_v31 = vsel %vm103_vm0, %v1201_v54, 0.0 }
 0x136   :  { %1212 = vpow2.f32 %v486_v22 }
 0x137   :  { %v2154_v39 = vpop.eup %1202 }
 0x138   :  { %2528 = vst [vmem:[#allocation66_spill] sm:$0xff] %v2154_v39  ;;  %v1205_v50 = vpop.eup %1204  ;;  %v575_v59 = vsel %vm103_vm0, %v2154_v39, 0.0 }
 0x139   :  { %669 = vadd.xlane.f32.xlu1 %v668_v31  ;;  %576 = vadd.xlane.f32.xlu0 %v575_v59  ;;  %v671_v23 = vsel %vm103_vm0, %v1205_v50, 0.0 }
 0x13b   :  { %v2159_v55 = vpop.eup %1206 }
 0x13c   :  { %2529 = vst [vmem:[#allocation67_spill] sm:$0xff] %v2159_v55  ;;  %v1209_v1 = vpop.eup %1208  ;;  %v578_v16 = vsel %vm103_vm0, %v2159_v55, 0.0 }
 0x13d   :  { %672 = vadd.xlane.f32.xlu1 %v671_v23  ;;  %579 = vadd.xlane.f32.xlu0 %v578_v16  ;;  %v674_v54 = vsel %vm103_vm0, %v1209_v1, 0.0 }
 0x13f   :  { %v2164_v7 = vpop.eup %1210 }
 0x140   :  { %2530 = vst [vmem:[#allocation68_spill] sm:$0xff] %v2164_v7  ;;  %v1213_v12 = vpop.eup %1212  ;;  %v581_v22 = vsel %vm103_vm0, %v2164_v7, 0.0 }
 0x141   :  { %675 = vadd.xlane.f32.xlu1 %v674_v54  ;;  %582 = vadd.xlane.f32.xlu0 %v581_v22  ;;  %v677_v14 = vsel %vm103_vm0, %v1213_v12, 0.0 }
 0x145   :  { %678 = vadd.xlane.f32.xlu1 %v677_v14 }
 0x152   :  { %v490_v31 = vpop.xlane.xlu0 %489 }
 0x153   :  { %1214 = vlog2.f32 %v490_v31 }
 0x156   :  { %v493_v50 = vpop.xlane.xlu1 %492  ;;  %v586_v59 = vpop.xlane.xlu0 %585 }
 0x157   :  { %1216 = vlog2.f32 %v493_v50 }
 0x158   :  { %1218 = vlog2.f32 %v586_v59  ;;  %v2531_v59 = vld [vmem:[#allocation19_spill] sm:$0xff] }
 0x159   :  { %1220 = vrcp.f32 %v490_v31 }
 0x15a   :  { %v589_v23 = vpop.xlane.xlu1 %588  ;;  %v496_v1 = vpop.xlane.xlu0 %495 }
 0x15b   :  { %1222 = vlog2.f32 %v589_v23 }
 0x15c   :  { %1224 = vrcp.f32 %v493_v50 }
 0x15d   :  { %v1215_v2 = vpop.eup %1214 }
 0x15e   :  { %v592_v16 = vpop.xlane.xlu1 %591  ;;  %v499_v13 = vpop.xlane.xlu0 %498  ;;  %v681_v54 = vmul.f32 0.6931472, %v1215_v2 }
 0x15f   :  { %1226 = vlog2.f32 %v592_v16 }
 0x160   :  { %v744_v15 = vsub.f32 %v1754_v62, %v681_v54  ;;  %1228 = vlog2.f32 %v496_v1 }
 0x161   :  { %v1217_v7 = vpop.eup %1216 }
 0x162   :  { %v595_v22 = vpop.xlane.xlu1 %594  ;;  %v502_v55 = vpop.xlane.xlu0 %501  ;;  %v683_v6 = vmul.f32 0.6931472, %v1217_v7 }
 0x163   :  { %v1219_v12 = vpop.eup %1218  ;;  %1230 = vlog2.f32 %v595_v22 }
 0x164   :  { %v1221_v14 = vpop.eup %1220  ;;  %v777_v39 = vmul.f32 0.6931472, %v1219_v12  ;;  %v745_v43 = vsub.f32 %v1762_v30, %v683_v6  ;;  %1232 = vlog2.f32 %v499_v13 }
 0x165   :  { %v1223_v58 = vpop.eup %1222  ;;  %v873_v34 = vmul.f32 %v1221_v14, %v1783_v8 }
 0x166   :  { %v840_v31 = vsub.f32 %v2531_v59, %v777_v39  ;;  %v779_v42 = vmul.f32 0.6931472, %v1223_v58  ;;  %v598_v51 = vpop.xlane.xlu1 %597  ;;  %v505_v23 = vpop.xlane.xlu0 %504 }
 0x167   :  { %v1225_v50 = vpop.eup %1224  ;;  %1234 = vlog2.f32 %v598_v51 }
 0x168   :  { %v936_v2 = vsub.f32 %v744_v15, %v840_v31  ;;  %v841_v26 = vsub.f32 %v1765_v46, %v779_v42  ;;  %v875_v7 = vmul.f32 %v1225_v50, %v1796_v5  ;;  %1236 = vlog2.f32 %v502_v55 }
 0x169   :  { %1238 = vrcp.f32 %v496_v1 }
 0x16a   :  { %v968_v35 = vmul.f32 %v936_v2, %v873_v34  ;;  %v937_v12 = vsub.f32 %v745_v43, %v841_v26  ;;  %v601_v18 = vpop.xlane.xlu1 %600  ;;  %v508_v27 = vpop.xlane.xlu0 %507  ;;  %1240 = vrcp.f32 %v499_v13 }
 0x16b   :  { %v1227_v26 = vpop.eup %1226  ;;  %1242 = vlog2.f32 %v601_v18 }
 0x16c   :  { %v969_v62 = vmul.f32 %v937_v12, %v875_v7  ;;  %v1000_v39 = vsel %vm103_vm0, %v968_v35, 0.0  ;;  %v1229_v34 = vpop.eup %1228  ;;  %1244 = vrcp.f32 %v502_v55  ;;  %v781_v16 = vmul.f32 0.6931472, %v1227_v26  ;;  %v2532_v12 = vld [vmem:[#allocation20_spill] sm:$0xff] }
 0x16d   :  { %v1231_v15 = vpop.eup %1230  ;;  %1246 = vlog2.f32 %v505_v23  ;;  %v685_v51 = vmul.f32 0.6931472, %v1229_v34 }
 0x16e   :  { %v1001_v58 = vsel %vm103_vm0, %v969_v62, 0.0  ;;  %v604_v54 = vpop.xlane.xlu1 %603  ;;  %v511_v59 = vpop.xlane.xlu0 %510  ;;  %1248 = vrcp.f32 %v505_v23  ;;  %v783_v31 = vmul.f32 0.6931472, %v1231_v15  ;;  %v842_v18 = vsub.f32 %v1773_v63, %v781_v16  ;;  %v2535_v16 = vld [vmem:[#allocation24_spill] sm:$0xff] }
 0x16f   :  { %v2177_v10 = vadd.f32 %v1001_v58, %v1000_v39  ;;  %v1233_v22 = vpop.eup %1232  ;;  %1250 = vlog2.f32 %v508_v27  ;;  %v746_v62 = vsub.f32 %v2532_v12, %v685_v51  ;;  %v2533_v39 = vld [vmem:[#allocation22_spill] sm:$0xff] }
 0x170   :  { %1252 = vlog2.f32 %v604_v54  ;;  %v687_v1 = vmul.f32 0.6931472, %v1233_v22  ;;  %v843_v23 = vsub.f32 %v2533_v39, %v783_v31 }
 0x171   :  { %v1235_v14 = vpop.eup %1234  ;;  %1254 = vrcp.f32 %v508_v27  ;;  %v938_v3 = vsub.f32 %v746_v62, %v842_v18 }
 0x172   :  { %v607_v30 = vpop.xlane.xlu1 %606  ;;  %v2179_v8 = vpop.xlane.xlu0 %513  ;;  %v785_v7 = vmul.f32 0.6931472, %v1235_v14  ;;  %v747_v63 = vsub.f32 %v2534_v19, %v687_v1 }
 0x173   :  { %v1237_v13 = vpop.eup %1236  ;;  %1256 = vlog2.f32 %v607_v30 }
 0x174   :  { %v1239_v55 = vpop.eup %1238  ;;  %1258 = vlog2.f32 %v511_v59  ;;  %v689_v15 = vmul.f32 0.6931472, %v1237_v13  ;;  %v844_v30 = vsub.f32 %v2535_v16, %v785_v7  ;;  %v939_v51 = vsub.f32 %v747_v63, %v843_v23 }
 0x175   :  { %v1241_v34 = vpop.eup %1240  ;;  %v877_v14 = vmul.f32 %v1239_v55, %v1809_v0 }
 0x176   :  { %v610_v46 = vpop.xlane.xlu1 %609  ;;  %v2181_v5 = vpop.xlane.xlu0 %516  ;;  %v879_v1 = vmul.f32 %v1241_v34, %v1822_v38 }
 0x177   :  { %1260 = vlog2.f32 %v610_v46  ;;  %v1243_v54 = vpop.eup %1242  ;;  %v2536_v46 = vld [vmem:[#allocation23_spill] sm:$0xff] }
 0x178   :  { %1262 = vrcp.f32 %v511_v59  ;;  %v1245_v27 = vpop.eup %1244  ;;  %v748_v39 = vsub.f32 %v2536_v46, %v689_v15  ;;  %v787_v18 = vmul.f32 0.6931472, %v1243_v54  ;;  %v970_v59 = vmul.f32 %v938_v3, %v877_v14 }
 0x179   :  { %1264 = vlog2.f32 %v2179_v8  ;;  %v1247_v22 = vpop.eup %1246  ;;  %v881_v54 = vmul.f32 %v1245_v27, %v1835_v47 }
 0x17a   :  { %v613_v43 = vpop.xlane.xlu1 %612  ;;  %v2183_v35 = vpop.xlane.xlu0 %519  ;;  %v940_v62 = vsub.f32 %v748_v39, %v844_v30  ;;  %v691_v16 = vmul.f32 0.6931472, %v1247_v22  ;;  %v845_v3 = vsub.f32 %v1806_v17, %v787_v18  ;;  %v1003_v38 = vsel %vm103_vm0, %v970_v59, 0.0  ;;  %v2537_v22 = vld [vmem:[#allocation25_spill] sm:$0xff] }
 0x17b   :  { %1266 = vlog2.f32 %v613_v43  ;;  %v1249_v13 = vpop.eup %1248  ;;  %v971_v43 = vmul.f32 %v939_v51, %v879_v1  ;;  %v1004_v18 = vadd.f32 %v1003_v38, %v2177_v10  ;;  %v2538_v10 = vld [vmem:[#allocation26_spill] sm:$0xff] }
 0x17c   :  { %1268 = vlog2.f32 %v2181_v5  ;;  %v1251_v19 = vpop.eup %1250  ;;  %v972_v30 = vmul.f32 %v940_v62, %v881_v54  ;;  %v749_v14 = vsub.f32 %v2537_v22, %v691_v16 }
 0x17d   :  { %v1253_v7 = vpop.eup %1252  ;;  %v1005_v51 = vsel %vm103_vm0, %v971_v43, 0.0  ;;  %v693_v46 = vmul.f32 0.6931472, %v1251_v19  ;;  %v883_v43 = vmul.f32 %v1249_v13, %v1848_v9 }
 0x17e   :  { %v616_v42 = vpop.xlane.xlu1 %615  ;;  %v2185_v6 = vpop.xlane.xlu0 %522  ;;  %v941_v59 = vsub.f32 %v749_v14, %v845_v3  ;;  %v1006_v16 = vadd.f32 %v1005_v51, %v1004_v18 }
 0x17f   :  { %1270 = vlog2.f32 %v616_v42  ;;  %v1255_v0 = vpop.eup %1254  ;;  %v789_v42 = vmul.f32 0.6931472, %v1253_v7  ;;  %v750_v54 = vsub.f32 %v2538_v10, %v693_v46  ;;  %v2542_v10 = vld [vmem:[#allocation30_spill] sm:$0xff] }
 0x180   :  { %1272 = vlog2.f32 %v2183_v35  ;;  %v1257_v15 = vpop.eup %1256 }
 0x181   :  { %v1259_v63 = vpop.eup %1258  ;;  %v791_v39 = vmul.f32 0.6931472, %v1257_v15  ;;  %v846_v7 = vsub.f32 %v1819_v21, %v789_v42  ;;  %v973_v42 = vmul.f32 %v941_v59, %v883_v43 }
 0x182   :  { %v619_v50 = vpop.xlane.xlu1 %618  ;;  %v2187_v2 = vpop.xlane.xlu0 %525 }
 0x183   :  { %1274 = vlog2.f32 %v619_v50  ;;  %v1261_v34 = vpop.eup %1260  ;;  %v942_v13 = vsub.f32 %v750_v54, %v846_v7 }
 0x184   :  { %1276 = vlog2.f32 %v2185_v6  ;;  %v1263_v50 = vpop.eup %1262  ;;  %v793_v62 = vmul.f32 0.6931472, %v1261_v34  ;;  %v885_v34 = vmul.f32 %v1255_v0, %v1861_v20 }
 0x185   :  { %1278 = vrcp.f32 %v2179_v8  ;;  %v1265_v27 = vpop.eup %1264  ;;  %v695_v8 = vmul.f32 0.6931472, %v1259_v63 }
 0x186   :  { %v622_v58 = vpop.xlane.xlu1 %621  ;;  %v2192_v26 = vpop.xlane.xlu0 %528  ;;  %v697_v3 = vmul.f32 0.6931472, %v1265_v27  ;;  %v848_v14 = vsub.f32 %v1845_v29, %v793_v62  ;;  %v2540_v27 = vld [vmem:[#allocation28_spill] sm:$0xff]  ;;  %v887_v29 = vmul.f32 %v1263_v50, %v1874_v24  ;;  %v974_v62 = vmul.f32 %v942_v13, %v885_v34 }
 0x187   :  { %1280 = vlog2.f32 %v622_v58  ;;  %v1267_v1 = vpop.eup %1266  ;;  %v1007_v58 = vsel %vm103_vm0, %v972_v30, 0.0 }
 0x188   :  { %1282 = vrcp.f32 %v2181_v5  ;;  %v1269_v19 = vpop.eup %1268  ;;  %v847_v5 = vsub.f32 %v1832_v25, %v791_v39  ;;  %v795_v30 = vmul.f32 0.6931472, %v1267_v1  ;;  %v1008_v25 = vadd.f32 %v1007_v58, %v1006_v16 }
 0x189   :  { %1284 = vlog2.f32 %v2187_v2  ;;  %v1271_v15 = vpop.eup %1270  ;;  %v699_v51 = vmul.f32 0.6931472, %v1269_v19  ;;  %v752_v18 = vsub.f32 %v2540_v27, %v697_v3 }
 0x18a   :  { %v625_v31 = vpop.xlane.xlu1 %624  ;;  %v2198_v12 = vpop.xlane.xlu0 %531  ;;  %1286 = vrcp.f32 %v2183_v35  ;;  %v2539_v35 = vld [vmem:[#allocation27_spill] sm:$0xff] }
 0x18b   :  { %1288 = vrcp.f32 %v2185_v6  ;;  %v1273_v38 = vpop.eup %1272  ;;  %v751_v22 = vsub.f32 %v2539_v35, %v695_v8  ;;  %v797_v6 = vmul.f32 0.6931472, %v1271_v15  ;;  %v1009_v8 = vsel %vm103_vm0, %v973_v42, 0.0 }
 0x18c   :  { %1290 = vlog2.f32 %v625_v31  ;;  %v701_v20 = vmul.f32 0.6931472, %v1273_v38  ;;  %v944_v19 = vsub.f32 %v752_v18, %v848_v14 }
 0x18d   :  { %v1275_v9 = vpop.eup %1274  ;;  %1292 = vrcp.f32 %v2187_v2  ;;  %v943_v39 = vsub.f32 %v751_v22, %v847_v5  ;;  %v849_v2 = vsub.f32 %v1858_v33, %v795_v30  ;;  %v850_v43 = vsub.f32 %v1871_v37, %v797_v6 }
 0x18e   :  { %v2204_v55 = vpop.xlane.xlu1 %627  ;;  %v2206_v23 = vpop.xlane.xlu0 %534  ;;  %1294 = vlog2.f32 %v2192_v26  ;;  %v799_v1 = vmul.f32 0.6931472, %v1275_v9  ;;  %v754_v54 = vsub.f32 %v2542_v10, %v701_v20 }
 0x18f   :  { %v1277_v46 = vpop.eup %1276  ;;  %1296 = vrcp.f32 %v2192_v26  ;;  %v2541_v26 = vld [vmem:[#allocation29_spill] sm:$0xff]  ;;  %v975_v33 = vmul.f32 %v943_v39, %v887_v29 }
 0x190   :  { %v1279_v59 = vpop.eup %1278  ;;  %1298 = vlog2.f32 %v2198_v12  ;;  %v753_v58 = vsub.f32 %v2541_v26, %v699_v51  ;;  %v703_v15 = vmul.f32 0.6931472, %v1277_v46  ;;  %v851_v42 = vsub.f32 %v1884_v41, %v799_v1  ;;  %v2544_v1 = vld [vmem:[#allocation32_spill] sm:$0xff] }
 0x191   :  { %v1281_v7 = vpop.eup %1280  ;;  %1300 = vlog2.f32 %v2204_v55  ;;  %v889_v50 = vmul.f32 %v1279_v59, %v1887_v28  ;;  %v946_v13 = vsub.f32 %v754_v54, %v850_v43  ;;  %v1010_v51 = vadd.f32 %v1009_v8, %v1008_v25 }
 0x192   :  { %v2215_v47 = vpop.xlane.xlu1 %630  ;;  %v2217_v17 = vpop.xlane.xlu0 %537  ;;  %1302 = vrcp.f32 %v2198_v12  ;;  %v945_v38 = vsub.f32 %v753_v58, %v849_v2  ;;  %v801_v34 = vmul.f32 0.6931472, %v1281_v7  ;;  %v1011_v12 = vsel %vm103_vm0, %v974_v62, 0.0 }
 0x193   :  { %v1283_v16 = vpop.eup %1282  ;;  %1304 = vlog2.f32 %v2215_v47  ;;  %v976_v30 = vmul.f32 %v944_v19, %v889_v50  ;;  %v2543_v47 = vld [vmem:[#allocation31_spill] sm:$0xff]  ;;  %v1013_v41 = vsel %vm103_vm0, %v975_v33, 0.0  ;;  %v1012_v59 = vadd.f32 %v1011_v12, %v1010_v51 }
 0x194   :  { %v1285_v24 = vpop.eup %1284  ;;  %1306 = vlog2.f32 %v2206_v23  ;;  %v891_v28 = vmul.f32 %v1283_v16, %v1900_v32  ;;  %v755_v35 = vsub.f32 %v2543_v47, %v703_v15  ;;  %v852_v18 = vsub.f32 %v1897_v45, %v801_v34 }
 0x195   :  { %v1287_v55 = vpop.eup %1286  ;;  %v705_v22 = vmul.f32 0.6931472, %v1285_v24  ;;  %v1014_v62 = vadd.f32 %v1013_v41, %v1012_v59 }
 0x196   :  { %v634_v21 = vpop.xlane.xlu1 %633  ;;  %v2229_v63 = vpop.xlane.xlu0 %540  ;;  %v893_v6 = vmul.f32 %v1287_v55, %v1913_v36  ;;  %v947_v27 = vsub.f32 %v755_v35, %v851_v42 }
 0x197   :  { %v1289_v37 = vpop.eup %1288  ;;  %1308 = vlog2.f32 %v634_v21  ;;  %v977_v21 = vmul.f32 %v945_v38, %v891_v28  ;;  %v756_v7 = vsub.f32 %v2544_v1, %v705_v22  ;;  %v2545_v38 = vld [vmem:[#allocation33_spill] sm:$0xff] }
 0x198   :  { %v1291_v9 = vpop.eup %1290  ;;  %1310 = vrcp.f32 %v2206_v23  ;;  %v1015_v23 = vsel %vm103_vm0, %v976_v30, 0.0  ;;  %v978_v36 = vmul.f32 %v946_v13, %v893_v6  ;;  %v895_v2 = vmul.f32 %v1289_v37, %v1926_v40 }
 0x199   :  { %v1293_v14 = vpop.eup %1292  ;;  %1312 = vlog2.f32 %v2217_v17  ;;  %v803_v25 = vmul.f32 0.6931472, %v1291_v9  ;;  %v1017_v26 = vsel %vm103_vm0, %v977_v21, 0.0  ;;  %v948_v43 = vsub.f32 %v756_v7, %v852_v18 }
 0x19a   :  { %v637_v31 = vpop.xlane.xlu1 %636  ;;  %v2238_v0 = vpop.xlane.xlu0 %543  ;;  %v979_v58 = vmul.f32 %v947_v27, %v895_v2  ;;  %v1016_v24 = vadd.f32 %v1015_v23, %v1014_v62  ;;  %v1019_v50 = vsel %vm103_vm0, %v978_v36, 0.0  ;;  %v897_v10 = vmul.f32 %v1293_v14, %v1939_v44 }
 0x19b   :  { %v1295_v32 = vpop.eup %1294  ;;  %1314 = vlog2.f32 %v637_v31  ;;  %v853_v40 = vsub.f32 %v1910_v49, %v803_v25 }
 0x19c   :  { %v1297_v20 = vpop.eup %1296  ;;  %1316 = vlog2.f32 %v2229_v63  ;;  %v707_v19 = vmul.f32 0.6931472, %v1295_v32  ;;  %v1018_v55 = vadd.f32 %v1017_v26, %v1016_v24  ;;  %v1021_v49 = vsel %vm103_vm0, %v979_v58, 0.0 }
 0x19d   :  { %v1299_v29 = vpop.eup %1298  ;;  %v980_v28 = vmul.f32 %v948_v43, %v897_v10  ;;  %v899_v6 = vmul.f32 %v1297_v20, %v1952_v48  ;;  %v2549_v10 = vld [vmem:[#allocation37_spill] sm:$0xff] }
 0x19e   :  { %v640_v5 = vpop.xlane.xlu1 %639  ;;  %v2251_v3 = vpop.xlane.xlu0 %546  ;;  %v757_v42 = vsub.f32 %v2545_v38, %v707_v19  ;;  %v709_v34 = vmul.f32 0.6931472, %v1299_v29  ;;  %v1020_v44 = vadd.f32 %v1019_v50, %v1018_v55 }
 0x19f   :  { %1318 = vlog2.f32 %v640_v5  ;;  %v1301_v8 = vpop.eup %1300 }
 0x1a0   :  { %1320 = vlog2.f32 %v2238_v0  ;;  %v1303_v16 = vpop.eup %1302  ;;  %v805_v54 = vmul.f32 0.6931472, %v1301_v8  ;;  %v949_v47 = vsub.f32 %v757_v42, %v853_v40  ;;  %v1022_v41 = vadd.f32 %v1021_v49, %v1020_v44 }
 0x1a1   :  { %v1305_v15 = vpop.eup %1304  ;;  %v901_v29 = vmul.f32 %v1303_v16, %v1965_v52 }
 0x1a2   :  { %v643_v46 = vpop.xlane.xlu1 %642  ;;  %v2262_v39 = vpop.xlane.xlu0 %549  ;;  %v807_v9 = vmul.f32 0.6931472, %v1305_v15  ;;  %v854_v22 = vsub.f32 %v1923_v53, %v805_v54  ;;  %v981_v25 = vmul.f32 %v949_v47, %v899_v6  ;;  %v2552_v47 = vld [vmem:[#allocation43_spill] sm:$0xff] }
 0x1a3   :  { %1322 = vlog2.f32 %v643_v46  ;;  %v1307_v33 = vpop.eup %1306  ;;  %v2546_v46 = vld [vmem:[#allocation34_spill] sm:$0xff] }
 0x1a4   :  { %1324 = vlog2.f32 %v2251_v3  ;;  %v1309_v5 = vpop.eup %1308  ;;  %v711_v14 = vmul.f32 0.6931472, %v1307_v33  ;;  %v758_v32 = vsub.f32 %v2546_v46, %v709_v34  ;;  %v855_v53 = vsub.f32 %v1936_v57, %v807_v9  ;;  %v2550_v34 = vld [vmem:[#allocation38_spill] sm:$0xff] }
 0x1a5   :  { %1326 = vrcp.f32 %v2217_v17  ;;  %v1311_v30 = vpop.eup %1310  ;;  %v809_v51 = vmul.f32 0.6931472, %v1309_v5  ;;  %v1025_v24 = vsel %vm103_vm0, %v981_v25, 0.0  ;;  %v2555_v25 = vld [vmem:[#allocation42_spill] sm:$0xff] }
 0x1a6   :  { %v646_v45 = vpop.xlane.xlu1 %645  ;;  %v2270_v31 = vpop.xlane.xlu0 %552  ;;  %v950_v36 = vsub.f32 %v758_v32, %v854_v22 }
 0x1a7   :  { %1328 = vlog2.f32 %v646_v45  ;;  %v1313_v13 = vpop.eup %1312  ;;  %v856_v1 = vsub.f32 %v1949_v61, %v809_v51  ;;  %v2548_v45 = vld [vmem:[#allocation36_spill] sm:$0xff]  ;;  %v903_v61 = vmul.f32 %v1311_v30, %v1978_v56 }
 0x1a8   :  { %1330 = vrcp.f32 %v2229_v63  ;;  %v1315_v35 = vpop.eup %1314  ;;  %v1023_v63 = vsel %vm103_vm0, %v980_v28, 0.0  ;;  %v713_v59 = vmul.f32 0.6931472, %v1313_v13  ;;  %v982_v40 = vmul.f32 %v950_v36, %v901_v29  ;;  %v2551_v28 = vld [vmem:[#allocation40_spill] sm:$0xff] }
 0x1a9   :  { %1332 = vlog2.f32 %v2262_v39  ;;  %v1317_v17 = vpop.eup %1316  ;;  %v811_v48 = vmul.f32 0.6931472, %v1315_v35  ;;  %v1024_v7 = vadd.f32 %v1023_v63, %v1022_v41 }
 0x1aa   :  { %v649_v37 = vpop.xlane.xlu1 %648  ;;  %v556_v12 = vpop.xlane.xlu0 %555  ;;  %1334 = vrcp.f32 %v2238_v0  ;;  %v2547_v0 = vld [vmem:[#allocation35_spill] sm:$0xff]  ;;  %v715_v8 = vmul.f32 0.6931472, %v1317_v17  ;;  %v760_v16 = vsub.f32 %v2548_v45, %v713_v59 }
 0x1ab   :  { %v1319_v18 = vpop.eup %1318  ;;  %1336 = vrcp.f32 %v2251_v3  ;;  %v759_v2 = vsub.f32 %v2547_v0, %v711_v14  ;;  %v1026_v32 = vadd.f32 %v1025_v24, %v1024_v7  ;;  %v2556_v7 = vld [vmem:[#allocation49_spill] sm:$0xff] }
 0x1ac   :  { %v1321_v23 = vpop.eup %1320  ;;  %1338 = vlog2.f32 %v649_v37  ;;  %v813_v57 = vmul.f32 0.6931472, %v1319_v18  ;;  %v952_v33 = vsub.f32 %v760_v16, %v856_v1  ;;  %v761_v54 = vsub.f32 %v2549_v10, %v715_v8  ;;  %v2554_v18 = vld [vmem:[#allocation46_spill] sm:$0xff]  ;;  %v2558_v24 = vld [vmem:[#allocation45_spill] sm:$0xff]  ;;  %v2559_v10 = vld [vmem:[#allocation52_spill] sm:$0xff] }
 0x1ad   :  { %v1323_v20 = vpop.eup %1322  ;;  %1340 = vrcp.f32 %v2262_v39  ;;  %v951_v52 = vsub.f32 %v759_v2, %v855_v53  ;;  %v717_v26 = vmul.f32 0.6931472, %v1321_v23  ;;  %v857_v39 = vsub.f32 %v1962_v4, %v811_v48 }
 0x1ae   :  { %v652_v21 = vpop.xlane.xlu1 %651  ;;  %v2286_v27 = vpop.xlane.xlu0 %558  ;;  %1342 = vlog2.f32 %v2270_v31  ;;  %v815_v43 = vmul.f32 0.6931472, %v1323_v20  ;;  %v858_v5 = vsub.f32 %v1975_v11, %v813_v57  ;;  %v1027_v11 = vsel %vm103_vm0, %v982_v40, 0.0  ;;  %v2557_v57 = vld [vmem:[#allocation41_spill] sm:$0xff] }
 0x1af   :  { %v1325_v19 = vpop.eup %1324  ;;  %1344 = vrcp.f32 %v2270_v31  ;;  %v983_v42 = vmul.f32 %v951_v52, %v903_v61  ;;  %v762_v37 = vsub.f32 %v2550_v34, %v717_v26  ;;  %v953_v49 = vsub.f32 %v761_v54, %v857_v39 }
 0x1b0   :  { %v1327_v58 = vpop.eup %1326  ;;  %1346 = vlog2.f32 %v556_v12  ;;  %v719_v55 = vmul.f32 0.6931472, %v1325_v19  ;;  %v859_v9 = vsub.f32 %v2551_v28, %v815_v43  ;;  %v1028_v20 = vadd.f32 %v1027_v11, %v1026_v32 }
 0x1b1   :  { %v1329_v15 = vpop.eup %1328  ;;  %1348 = vlog2.f32 %v652_v21  ;;  %v905_v4 = vmul.f32 %v1327_v58, %v1991_v60  ;;  %v954_v14 = vsub.f32 %v762_v37, %v858_v5  ;;  %v2553_v60 = vld [vmem:[#allocation39_spill] sm:$0xff]  ;;  %v1029_v21 = vsel %vm103_vm0, %v983_v42, 0.0 }
 0x1b2   :  { %v655_v3 = vpop.xlane.xlu1 %654  ;;  %v2296_v62 = vpop.xlane.xlu0 %561  ;;  %1350 = vrcp.f32 %v556_v12  ;;  %v817_v13 = vmul.f32 0.6931472, %v1329_v15  ;;  %v763_v51 = vsub.f32 %v2553_v60, %v719_v55  ;;  %v1030_v16 = vadd.f32 %v1029_v21, %v1028_v20  ;;  %v2566_v20 = vld [vmem:[#allocation50_spill] sm:$0xff] }
 0x1b3   :  { %v1331_v50 = vpop.eup %1330  ;;  %1352 = vlog2.f32 %v655_v3  ;;  %v984_v12 = vmul.f32 %v952_v33, %v905_v4  ;;  %v2560_v4 = vld [vmem:[#allocation44_spill] sm:$0xff] }
 0x1b4   :  { %v1333_v56 = vpop.eup %1332  ;;  %1354 = vlog2.f32 %v2286_v27  ;;  %v907_v35 = vmul.f32 %v1331_v50, %v2552_v47  ;;  %v955_v23 = vsub.f32 %v763_v51, %v859_v9  ;;  %v860_v29 = vsub.f32 %v2555_v25, %v817_v13 }
 0x1b5   :  { %v1335_v30 = vpop.eup %1334  ;;  %v721_v17 = vmul.f32 0.6931472, %v1333_v56  ;;  %v1031_v36 = vsel %vm103_vm0, %v984_v12, 0.0  ;;  %v2561_v12 = vld [vmem:[#allocation55_spill] sm:$0xff] }
 0x1b6   :  { %v658_v31 = vpop.xlane.xlu1 %657  ;;  %v565_v38 = vpop.xlane.xlu0 %564  ;;  %v909_v63 = vmul.f32 %v1335_v30, %v2554_v18  ;;  %v985_v59 = vmul.f32 %v953_v49, %v907_v35  ;;  %v1032_v15 = vadd.f32 %v1031_v36, %v1030_v16  ;;  %v2562_v35 = vld [vmem:[#allocation48_spill] sm:$0xff]  ;;  %v2568_v16 = vld [vmem:[#allocation57_spill] sm:$0xff] }
 0x1b7   :  { %v1337_v44 = vpop.eup %1336  ;;  %1356 = vlog2.f32 %v658_v31  ;;  %v764_v3 = vsub.f32 %v2557_v57, %v721_v17 }
 0x1b8   :  { %v1339_v22 = vpop.eup %1338  ;;  %1358 = vlog2.f32 %v2296_v62  ;;  %v986_v1 = vmul.f32 %v954_v14, %v909_v63  ;;  %v911_v8 = vmul.f32 %v1337_v44, %v2556_v7  ;;  %v1033_v61 = vsel %vm103_vm0, %v985_v59, 0.0  ;;  %v2567_v7 = vld [vmem:[#allocation54_spill] sm:$0xff] }
 0x1b9   :  { %v1341_v46 = vpop.eup %1340  ;;  %v819_v0 = vmul.f32 0.6931472, %v1339_v22  ;;  %v956_v43 = vsub.f32 %v764_v3, %v860_v29  ;;  %v1034_v42 = vadd.f32 %v1033_v61, %v1032_v15  ;;  %v2565_v29 = vld [vmem:[#allocation58_spill] sm:$0xff]  ;;  %v2570_v15 = vld [vmem:[#allocation53_spill] sm:$0xff] }
 0x1ba   :  { %v661_v41 = vpop.xlane.xlu1 %660  ;;  %v568_v6 = vpop.xlane.xlu0 %567  ;;  %v987_v39 = vmul.f32 %v955_v23, %v911_v8  ;;  %v1035_v50 = vsel %vm103_vm0, %v986_v1, 0.0  ;;  %v913_v54 = vmul.f32 %v1341_v46, %v2559_v10  ;;  %v2563_v46 = vld [vmem:[#allocation47_spill] sm:$0xff]  ;;  %v2572_v10 = vld [vmem:[#allocation9_spill] sm:$0xff] }
 0x1bb   :  { %1360 = vlog2.f32 %v661_v41  ;;  %v1343_v53 = vpop.eup %1342  ;;  %v861_v40 = vsub.f32 %v2558_v24, %v819_v0  ;;  %v1036_v13 = vadd.f32 %v1035_v50, %v1034_v42 }
 0x1bc   :  { %1362 = vlog2.f32 %v565_v38  ;;  %v1345_v48 = vpop.eup %1344  ;;  %v723_v26 = vmul.f32 0.6931472, %v1343_v53  ;;  %v1037_v49 = vsel %vm103_vm0, %v987_v39, 0.0  ;;  %v988_v28 = vmul.f32 %v956_v43, %v913_v54  ;;  %v2564_v53 = vld [vmem:[#allocation51_spill] sm:$0xff] }
 0x1bd   :  { %1364 = vrcp.f32 %v2286_v27  ;;  %v1347_v2 = vpop.eup %1346  ;;  %v915_v47 = vmul.f32 %v1345_v48, %v2561_v12  ;;  %v1038_v41 = vadd.f32 %v1037_v49, %v1036_v13  ;;  %v2569_v43 = vld [vmem:[#allocation59_spill] sm:$0xff]  ;;  %v2573_v49 = vld [vmem:[#allocation60_spill] sm:$0xff] }
 0x1be   :  { %1366 = vlog2.f32 %v568_v6  ;;  %v664_v19 = vpop.xlane.xlu1 %663  ;;  %v571_v52 = vpop.xlane.xlu0 %570  ;;  %v765_v34 = vsub.f32 %v2560_v4, %v723_v26  ;;  %v725_v37 = vmul.f32 0.6931472, %v1347_v2  ;;  %v1039_v63 = vsel %vm103_vm0, %v988_v28, 0.0 }
 0x1bf   :  { %v1349_v45 = vpop.eup %1348  ;;  %1368 = vlog2.f32 %v664_v19 }
 0x1c0   :  { %v1351_v58 = vpop.eup %1350  ;;  %1370 = vlog2.f32 %v571_v52  ;;  %v821_v5 = vmul.f32 0.6931472, %v1349_v45  ;;  %v957_v44 = vsub.f32 %v765_v34, %v861_v40  ;;  %v766_v32 = vsub.f32 %v2563_v46, %v725_v37 }
 0x1c1   :  { %v1353_v27 = vpop.eup %1352  ;;  %1372 = vrcp.f32 %v2296_v62  ;;  %v917_v48 = vmul.f32 %v1351_v58, %v2565_v29  ;;  %v1040_v45 = vadd.f32 %v1039_v63, %v1038_v41 }
 0x1c2   :  { %v1355_v33 = vpop.eup %1354  ;;  %1374 = vrcp.f32 %v565_v38  ;;  %v667_v55 = vpop.xlane.xlu1 %666  ;;  %v823_v62 = vmul.f32 0.6931472, %v1353_v27  ;;  %v862_v22 = vsub.f32 %v2562_v35, %v821_v5  ;;  %v989_v25 = vmul.f32 %v957_v44, %v915_v47 }
 0x1c3   :  { %v574_v31 = vpop.xlane.xlu0 %573  ;;  %v1357_v56 = vpop.eup %1356  ;;  %1376 = vlog2.f32 %v667_v55  ;;  %v727_v11 = vmul.f32 0.6931472, %v1355_v33  ;;  %v2571_v33 = vld [vmem:[#allocation56_spill] sm:$0xff] }
 0x1c4   :  { %v1359_v30 = vpop.eup %1358  ;;  %1378 = vlog2.f32 %v574_v31  ;;  %v825_v14 = vmul.f32 0.6931472, %v1357_v56  ;;  %v958_v1 = vsub.f32 %v766_v32, %v862_v22  ;;  %v2576_v22 = vld [vmem:[#allocation61_spill] sm:$0xff] }
 0x1c5   :  { %v1361_v9 = vpop.eup %1360  ;;  %1380 = vrcp.f32 %v568_v6  ;;  %v863_v6 = vsub.f32 %v2564_v53, %v823_v62  ;;  %v729_v59 = vmul.f32 0.6931472, %v1359_v30  ;;  %v767_v36 = vsub.f32 %v2566_v20, %v727_v11 }
 0x1c6   :  { %v1363_v38 = vpop.eup %1362  ;;  %1382 = vrcp.f32 %v571_v52  ;;  %v670_v60 = vpop.xlane.xlu1 %669  ;;  %v827_v21 = vmul.f32 0.6931472, %v1361_v9  ;;  %v864_v8 = vsub.f32 %v2567_v7, %v825_v14  ;;  %v990_v56 = vmul.f32 %v958_v1, %v917_v48  ;;  %v2574_v9 = vld [vmem:[#allocation8_spill] sm:$0xff] }
 0x1c7   :  { %v577_v51 = vpop.xlane.xlu0 %576  ;;  %v1365_v17 = vpop.eup %1364  ;;  %1384 = vlog2.f32 %v670_v60  ;;  %v731_v0 = vmul.f32 0.6931472, %v1363_v38  ;;  %v959_v27 = vsub.f32 %v767_v36, %v863_v6  ;;  %v768_v24 = vsub.f32 %v2570_v15, %v729_v59  ;;  %v2575_v38 = vld [vmem:[#allocation11_spill] sm:$0xff]  ;;  %v2578_v6 = vld [vmem:[#allocation62_spill] sm:$0xff]  ;;  %v2579_v48 = vld [vmem:[#allocation12_spill] sm:$0xff] }
 0x1c8   :  { %v1367_v18 = vpop.eup %1366  ;;  %1386 = vlog2.f32 %v577_v51  ;;  %v865_v26 = vsub.f32 %v2568_v16, %v827_v21  ;;  %v919_v58 = vmul.f32 %v1365_v17, %v2569_v43  ;;  %v1043_v32 = vsel %vm103_vm0, %v990_v56, 0.0  ;;  %v2580_v36 = vld [vmem:[#allocation13_spill] sm:$0xff]  ;;  %v2583_v15 = vld [vmem:[#allocation14_spill] sm:$0xff] }
 0x1c9   :  { %v1369_v23 = vpop.eup %1368  ;;  %1388 = vrcp.f32 %v574_v31  ;;  %v733_v61 = vmul.f32 0.6931472, %v1367_v18  ;;  %v769_v50 = vsub.f32 %v2571_v33, %v731_v0  ;;  %v1041_v31 = vsel %vm103_vm0, %v989_v25, 0.0  ;;  %v2585_v56 = vld [vmem:[#allocation66_spill] sm:$0xff] }
 0x1ca   :  { %v1371_v2 = vpop.eup %1370  ;;  %v829_v57 = vmul.f32 0.6931472, %v1369_v23  ;;  %v673_v3 = vpop.xlane.xlu1 %672  ;;  %v960_v42 = vsub.f32 %v768_v24, %v864_v8  ;;  %v991_v11 = vmul.f32 %v959_v27, %v919_v58  ;;  %v1042_v46 = vadd.f32 %v1041_v31, %v1040_v45  ;;  %v2582_v58 = vld [vmem:[#allocation65_spill] sm:$0xff] }
 0x1cb   :  { %v580_v19 = vpop.xlane.xlu0 %579  ;;  %v1373_v52 = vpop.eup %1372  ;;  %1390 = vlog2.f32 %v673_v3  ;;  %v735_v5 = vmul.f32 0.6931472, %v1371_v2  ;;  %v961_v62 = vsub.f32 %v769_v50, %v865_v26  ;;  %v770_v13 = vsub.f32 %v2574_v9, %v733_v61 }
 0x1cc   :  { %v1375_v39 = vpop.eup %1374  ;;  %1392 = vlog2.f32 %v580_v19  ;;  %v866_v54 = vsub.f32 %v2572_v10, %v829_v57  ;;  %v921_v28 = vmul.f32 %v1373_v52, %v2573_v49  ;;  %v1045_v29 = vsel %vm103_vm0, %v991_v11, 0.0  ;;  %v2581_v57 = vld [vmem:[#allocation63_spill] sm:$0xff] }
 0x1cd   :  { %v1377_v40 = vpop.eup %1376  ;;  %1394 = vrcp.f32 %v577_v51  ;;  %v923_v14 = vmul.f32 %v1375_v39, %v2576_v22  ;;  %v2577_v51 = vld [vmem:[#allocation10_spill] sm:$0xff]  ;;  %v1044_v7 = vadd.f32 %v1043_v32, %v1042_v46  ;;  %v2588_v22 = vld [vmem:[#allocation67_spill] sm:$0xff]  ;;  %v2590_v32 = vld [vmem:[#allocation64_spill] sm:$0xff] }
 0x1ce   :  { %v1379_v55 = vpop.eup %1378  ;;  %v831_v4 = vmul.f32 0.6931472, %v1377_v40  ;;  %v676_v34 = vpop.xlane.xlu1 %675  ;;  %v962_v60 = vsub.f32 %v770_v13, %v866_v54  ;;  %v771_v17 = vsub.f32 %v2577_v51, %v735_v5  ;;  %v992_v21 = vmul.f32 %v960_v42, %v921_v28  ;;  %v2584_v40 = vld [vmem:[#allocation15_spill] sm:$0xff]  ;;  %v2587_v13 = vld [vmem:[#allocation17_spill] sm:$0xff] }
 0x1cf   :  { %v583_v37 = vpop.xlane.xlu0 %582  ;;  %v1381_v30 = vpop.eup %1380  ;;  %1396 = vlog2.f32 %v676_v34  ;;  %v737_v47 = vmul.f32 0.6931472, %v1379_v55  ;;  %v993_v53 = vmul.f32 %v961_v62, %v923_v14  ;;  %v1046_v61 = vadd.f32 %v1045_v29, %v1044_v7  ;;  %v2586_v62 = vld [vmem:[#allocation16_spill] sm:$0xff] }
 0x1d0   :  { %v1383_v44 = vpop.eup %1382  ;;  %v867_v12 = vsub.f32 %v2575_v38, %v831_v4  ;;  %1398 = vlog2.f32 %v583_v37  ;;  %v925_v59 = vmul.f32 %v1381_v30, %v2578_v6  ;;  %v1047_v52 = vsel %vm103_vm0, %v992_v21, 0.0 }
 0x1d1   :  { %v1385_v35 = vpop.eup %1384  ;;  %1400 = vrcp.f32 %v580_v19  ;;  %v772_v20 = vsub.f32 %v2579_v48, %v737_v47  ;;  %v927_v3 = vmul.f32 %v1383_v44, %v2581_v57  ;;  %v1049_v39 = vsel %vm103_vm0, %v993_v53, 0.0 }
 0x1d2   :  { %v1387_v41 = vpop.eup %1386  ;;  %v833_v18 = vmul.f32 0.6931472, %v1385_v35  ;;  %v679_v63 = vpop.xlane.xlu1 %678  ;;  %v963_v23 = vsub.f32 %v771_v17, %v867_v12  ;;  %v994_v8 = vmul.f32 %v962_v60, %v925_v59  ;;  %v1048_v54 = vadd.f32 %v1047_v52, %v1046_v61  ;;  %v2591_v59 = vld [vmem:[#allocation68_spill] sm:$0xff] }
 0x1d3   :  { %1402 = vlog2.f32 %v679_v63  ;;  %v1389_v25 = vpop.eup %1388  ;;  %v739_v2 = vmul.f32 0.6931472, %v1387_v41  ;;  %v2589_v41 = vld [vmem:[#allocation18_spill] sm:$0xff] }
 0x1d4   :  { %v868_v0 = vsub.f32 %v2580_v36, %v833_v18  ;;  %1404 = vrcp.f32 %v583_v37  ;;  %v995_v43 = vmul.f32 %v963_v23, %v927_v3  ;;  %v929_v27 = vmul.f32 %v1389_v25, %v2582_v58 }
 0x1d5   :  { %v1391_v1 = vpop.eup %1390  ;;  %v773_v24 = vsub.f32 %v2583_v15, %v739_v2  ;;  %v1051_v5 = vsel %vm103_vm0, %v994_v8, 0.0  ;;  %v1050_v30 = vadd.f32 %v1049_v39, %v1048_v54 }
 0x1d6   :  { %v1393_v19 = vpop.eup %1392  ;;  %v964_v45 = vsub.f32 %v772_v20, %v868_v0  ;;  %v835_v16 = vmul.f32 0.6931472, %v1391_v1  ;;  %v1053_v49 = vsel %vm103_vm0, %v995_v43, 0.0 }
 0x1d7   :  { %v1395_v26 = vpop.eup %1394  ;;  %v741_v50 = vmul.f32 0.6931472, %v1393_v19  ;;  %v1052_v12 = vadd.f32 %v1051_v5, %v1050_v30 }
 0x1d8   :  { %v869_v33 = vsub.f32 %v2584_v40, %v835_v16  ;;  %v996_v31 = vmul.f32 %v964_v45, %v929_v27  ;;  %v931_v42 = vmul.f32 %v1395_v26, %v2585_v56 }
 0x1d9   :  { %v1397_v10 = vpop.eup %1396  ;;  %v774_v9 = vsub.f32 %v2586_v62, %v741_v50  ;;  %v1054_v17 = vadd.f32 %v1053_v49, %v1052_v12 }
 0x1da   :  { %v1399_v55 = vpop.eup %1398  ;;  %v965_v4 = vsub.f32 %v773_v24, %v869_v33  ;;  %v837_v34 = vmul.f32 0.6931472, %v1397_v10  ;;  %v1055_v60 = vsel %vm103_vm0, %v996_v31, 0.0 }
 0x1db   :  { %v1401_v37 = vpop.eup %1400  ;;  %v743_v11 = vmul.f32 0.6931472, %v1399_v55  ;;  %v1056_v53 = vadd.f32 %v1055_v60, %v1054_v17 }
 0x1dc   :  { %v997_v28 = vmul.f32 %v965_v4, %v931_v42  ;;  %v870_v44 = vsub.f32 %v2587_v13, %v837_v34  ;;  %v933_v14 = vmul.f32 %v1401_v37, %v2588_v22 }
 0x1dd   :  { %v1403_v38 = vpop.eup %1402  ;;  %v775_v46 = vsub.f32 %v2589_v41, %v743_v11 }
 0x1de   :  { %v966_v47 = vsub.f32 %v774_v9, %v870_v44  ;;  %v839_v35 = vmul.f32 0.6931472, %v1403_v38  ;;  %v1405_v51 = vpop.eup %1404  ;;  %v1057_v63 = vsel %vm103_vm0, %v997_v28, 0.0 }
 0x1df   :  { %v935_v23 = vmul.f32 %v1405_v51, %v2591_v59  ;;  %v1058_v29 = vadd.f32 %v1057_v63, %v1056_v53 }
 0x1e0   :  { %v871_v21 = vsub.f32 %v2590_v32, %v839_v35  ;;  %v998_v18 = vmul.f32 %v966_v47, %v933_v14 }
 0x1e2   :  { %v967_v6 = vsub.f32 %v775_v46, %v871_v21  ;;  %v1059_v25 = vsel %vm103_vm0, %v998_v18, 0.0 }
 0x1e3   :  { %v1060_v20 = vadd.f32 %v1059_v25, %v1058_v29 }
 0x1e4   :  { %v999_v48 = vmul.f32 %v967_v6, %v935_v23 }
 0x1e6   :  { %v1061_v36 = vsel %vm103_vm0, %v999_v48, 0.0 }
 0x1e7   :  { %v1062_v0 = vadd.f32 %v1061_v36, %v1060_v20 }
 0x1e9   :  { %1063 = vadd.xlane.f32.xlu0 %v1062_v0 }
 0x276   :  { %v1064_v2 = vpop.xlane.xlu0 %1063 }
 0x277   :  { %v1065_v1 = vrot.slane %v1064_v2, 4 }
 0x279   :  { %v1066_v7 = vadd.f32 %v1065_v1, %v1064_v2 }
 0x27b   :  { %v1067_v8 = vrot.slane %v1066_v7, 2 }
 0x27d   :  { %v1068_v57 = vadd.f32 %v1067_v8, %v1066_v7 }
 0x27f   :  { %v1069_v3 = vrot.slane %v1068_v57, 1 }
 0x281   :  { %v1070_v19 = vadd.f32 %v1069_v3, %v1068_v57 }
 0x283   :  { %1080 = vpush %v1070_v19 }
 0x2b4   :  { %s1081_s1 = spop %1080 }
 0x2b5   :  { %v1072_v52 = vstv %s1081_s1 }
 0x2b6   :  { %1073 = vst [vmem:[%s2375_s2] sm:$0x1] %v1072_v52 }
 0x2b7   :  { %1078 = vsyncpa [#allocation3], 1 }
 0x2b8   :  { %1079 = vsyncpa [#allocation5], 1 }

</bundles_post_ra>
